<compile_context>
chip_gen: v7x
topology: tpu7x:2x2x1
jax: 0.10.0
libtpu: 0.0.40
codegen_flags: <defaults>
</compile_context>

<pallas_src>
import math

import jax
import jax.numpy as jnp
from jax.experimental import pallas as pl
from jax.experimental.pallas import tpu as pltpu

# ---------------- model config (small, consistent with the forward pass) --------------
VOCAB = 100
TYPE_VOCAB = 2
MAX_POS = 16
HIDDEN = 32
N_HEADS = 2
HEAD_DIM = HIDDEN // N_HEADS
INTERMEDIATE = 64
N_LAYERS = 2
LN_EPS = 1e-12
ATTN_SCALE = 1.0 / math.sqrt(HEAD_DIM)
TABLE_ROWS = VOCAB + MAX_POS + TYPE_VOCAB   # packed embedding table rows


# ------------------------------ in-kernel helpers --------------------------------------
def _layernorm(x, g, b):
    mean = jnp.mean(x, axis=-1, keepdims=True)
    xc = x - mean
    var = jnp.mean(xc * xc, axis=-1, keepdims=True)
    inv = jax.lax.rsqrt(var + LN_EPS)
    return xc * inv * g + b


def _gelu(x):
    # TODO(synk): tanh-approx GELU (EUP tanh); HF BERT default is exact erf-GELU.
    return 0.5 * x * (1.0 + jnp.tanh(0.7978845608028654 * (x + 0.044715 * x * x * x)))


# ------------------------------- fused forward kernel ----------------------------------
def _fused_forward_kernel(ints_ref, table_ref, whh_ref, wih_ref, vecs_ref, head_ref, o_ref):
    """One batch *tile* (Bt samples) per grid step; whole model runs out of VMEM/vregs.

    ints:  [Bt, 3, S]  int32 rows: input_ids | token_type_ids | attention_mask
    table: [VOCAB+MAX_POS+TYPE_VOCAB, H]  packed word|pos|type embedding table
    whh:   [L, H, 3H + H + I]   packed wqkv | wo | wi
    wih:   [L, I, H]            wo2 (FFN output projection)
    vecs:  [L, 8, 3H]           packed per-layer biases / LN params (one per row)
    head:  [H+5, H]             pool_w rows, then pool_b, score_w, emb_ln_g, emb_ln_b, score_b
    o:     [1, Bt, 1]           sigmoid(score) for this tile
    """
    Bt, _, S = ints_ref.shape
    H, D, I = HIDDEN, HEAD_DIM, INTERMEDIATE
    M = Bt * S

    ints = ints_ref[...]
    ids = ints[:, 0, :]                                    # [Bt, S] int32
    tt = ints[:, 1, :]                                     # [Bt, S] int32
    mask = ints[:, 2, :].astype(jnp.float32)               # [Bt, S]

    # ---- embeddings: word + position + type gathers fused into ONE one-hot GEMM ----
    col = jax.lax.broadcasted_iota(jnp.int32, (Bt, S, TABLE_ROWS), 2)
    pos = jax.lax.broadcasted_iota(jnp.int32, (Bt, S, TABLE_ROWS), 1)
    onehot = ((col == ids[:, :, None])
              | (col == VOCAB + pos)
              | (col == VOCAB + MAX_POS + tt[:, :, None])).astype(jnp.float32)
    emb = jnp.dot(onehot.reshape(M, TABLE_ROWS), table_ref[...],
                  preferred_element_type=jnp.float32)      # [M, H]

    head = head_ref[...]
    emb_ln_g = head[H + 2:H + 3, :]
    emb_ln_b = head[H + 3:H + 4, :]
    h = _layernorm(emb, emb_ln_g, emb_ln_b)                # [M, H]

    # Additive attention-mask bias, broadcast ONCE and reused across heads/layers.
    bias = jnp.broadcast_to(((1.0 - mask) * -1e9)[:, None, :], (Bt, S, S))

    for l in range(N_LAYERS):                              # static unroll
        whh = whh_ref[l]                                   # [H, 3H + H + I]
        wqkv = whh[:, :3 * H]
        wo = whh[:, 3 * H:4 * H]
        wi = whh[:, 4 * H:]
        wo2 = wih_ref[l]                                   # [I, H]
        vec = vecs_ref[l]                                  # [8, 3H]
        bqkv = vec[0:1, :]                                 # [1, 3H]
        bo = vec[1:2, :H]
        ln1_g = vec[2:3, :H]
        ln1_b = vec[3:4, :H]
        bi = vec[4:5, :I]
        bo2 = vec[5:6, :H]
        ln2_g = vec[6:7, :H]
        ln2_b = vec[7:8, :H]

        # ---- self-attention: fused QKV projection on the whole batch tile ----
        qkv = (jnp.dot(h, wqkv, preferred_element_type=jnp.float32) + bqkv)   # [M, 3H]
        qkv = qkv.reshape(Bt, S, 3 * H)
        ctx_heads = []
        for hd in range(N_HEADS):                          # static unroll
            q = qkv[:, :, hd * D:(hd + 1) * D]             # [Bt, S, D]
            k = qkv[:, :, H + hd * D:H + (hd + 1) * D]
            v = qkv[:, :, 2 * H + hd * D:2 * H + (hd + 1) * D]
            s = jnp.einsum("bqd,bkd->bqk", q, k,
                           preferred_element_type=jnp.float32) * ATTN_SCALE + bias
            m = jnp.max(s, axis=-1, keepdims=True)
            p = jnp.exp(s - m)
            p = p * pl.reciprocal(jnp.sum(p, axis=-1, keepdims=True), approx=True)
            ctx_heads.append(jnp.einsum("bqk,bkd->bqd", p, v,
                                        preferred_element_type=jnp.float32))  # [Bt,S,D]
        ctx = jnp.concatenate(ctx_heads, axis=-1).reshape(M, H)
        attn = jnp.dot(ctx, wo, preferred_element_type=jnp.float32) + bo       # one GEMM
        h1 = _layernorm(attn + h, ln1_g, ln1_b)            # residual + LN

        # ---- feed-forward ----
        inter = _gelu(jnp.dot(h1, wi, preferred_element_type=jnp.float32) + bi)
        ffn = jnp.dot(inter, wo2, preferred_element_type=jnp.float32) + bo2
        h = _layernorm(ffn + h1, ln2_g, ln2_b)             # residual + LN

    # ---- pooler (tanh on CLS) -> score head -> sigmoid ----
    cls = h.reshape(Bt, S, H)[:, 0, :]                     # [Bt, H]
    pool_w = head[:H, :]
    pool_b = head[H:H + 1, :]
    score_w = head[H + 1:H + 2, :]
    score_b = head[H + 4, 0]
    pooled = jnp.tanh(jnp.dot(cls, pool_w, preferred_element_type=jnp.float32) + pool_b)
    logit = jnp.sum(pooled * score_w, axis=-1, keepdims=True) + score_b        # [Bt, 1]
    o_ref[0] = (1.0 / (1.0 + jnp.exp(-logit))).astype(o_ref.dtype)


# ------------------------------ parameter construction ---------------------------------
def init_params(seed=0):
    """Deterministic small BERT-style params, stored pre-packed for the kernel."""
    key = jax.random.PRNGKey(seed)

    def nxt():
        nonlocal key
        key, sub = jax.random.split(key)
        return sub

    def w(shape, scale=0.02):
        return scale * jax.random.normal(nxt(), shape, jnp.float32)

    L, H, I = N_LAYERS, HIDDEN, INTERMEDIATE

    word_emb = w((VOCAB, H))
    pos_emb = w((MAX_POS, H))
    type_emb = w((TYPE_VOCAB, H))
    emb_table = jnp.concatenate([word_emb, pos_emb, type_emb], axis=0)   # [118, H]

    wqkv = w((L, H, 3 * H))
    wo = w((L, H, H))
    wi = w((L, H, I))
    wo2 = w((L, I, H))
    w_hh = jnp.concatenate([wqkv, wo, wi], axis=-1)                      # [L, H, 3H+H+I]

    # per-layer vectors: rows = bqkv, bo, ln1_g, ln1_b, bi, bo2, ln2_g, ln2_b
    vecs = jnp.zeros((L, 8, 3 * H), jnp.float32)
    vecs = vecs.at[:, 2, :H].set(1.0)    # ln1 gamma
    vecs = vecs.at[:, 6, :H].set(1.0)    # ln2 gamma
    # all biases and LN betas stay zero

    # head pack: rows 0..H-1 pool_w, H pool_b, H+1 score_w, H+2 emb_ln_g, H+3 emb_ln_b,
    # H+4 [score_b, 0, ...]
    head = jnp.zeros((H + 5, H), jnp.float32)
    head = head.at[:H, :].set(w((H, H)))          # pool_w
    head = head.at[H + 1, :].set(w((H,)))         # score_w
    head = head.at[H + 2, :].set(1.0)             # emb_ln gamma

    return {"emb_table": emb_table, "w_hh": w_hh, "w_ih": wo2, "vecs": vecs, "head": head}


# ------------------------------------- forward ------------------------------------------
def _default_batch_tile(batch, seq):
    if batch <= 1:
        return 1
    cap = max(1, 256 // seq)                 # keep M = Bt*seq <= 256 (v6e/v7x MXU width)
    return max(1, min(cap, pl.cdiv(batch, 2)))   # >=2 grid steps -> both v7x TCs get work


def model_level_forward(params, input_ids, attention_mask, token_type_ids, batch_tile=None):
    """Mirrors ModelLevel.forward: BERT -> pooler_output -> Linear(H,1) -> sigmoid."""
    B, S = input_ids.shape
    assert S <= MAX_POS, (S, MAX_POS)
    L, H, I = N_LAYERS, HIDDEN, INTERMEDIATE

    Bt = batch_tile if batch_tile is not None else _default_batch_tile(B, S)
    num_tiles = pl.cdiv(B, Bt)
    B_pad = num_tiles * Bt

    # Pack ids | token_type | mask into one int32 block; pad batch to a tile multiple.
    ints = jnp.stack([input_ids, token_type_ids, attention_mask], axis=1).astype(jnp.int32)
    if B_pad != B:
        ints = jnp.pad(ints, ((0, B_pad - B), (0, 0), (0, 0)))            # [B_pad, 3, S]

    def full(shape):
        return pl.BlockSpec(shape, lambda b: (0,) * len(shape))

    out = pl.pallas_call(
        _fused_forward_kernel,
        out_shape=jax.ShapeDtypeStruct((num_tiles, Bt, 1), jnp.float32),
        grid=(num_tiles,),
        in_specs=[
            pl.BlockSpec((Bt, 3, S), lambda b: (b, 0, 0)),                # ids|type|mask
            full((TABLE_ROWS, H)),                                        # packed emb table
            full((L, H, 3 * H + H + I)),                                  # wqkv|wo|wi
            full((L, I, H)),                                              # wo2
            full((L, 8, 3 * H)),                                          # per-layer vecs
            full((H + 5, H)),                                             # pooler/score/embLN
        ],
        out_specs=pl.BlockSpec((1, Bt, 1), lambda b: (b, 0, 0)),
        compiler_params=pltpu.CompilerParams(
            dimension_semantics=("parallel",),
            vmem_limit_bytes=32 * 1024 * 1024,   # explicit (v5e default scoped limit note)
        ),
    )(
        ints, params["emb_table"], params["w_hh"], params["w_ih"],
        params["vecs"], params["head"],
    )
    return out.reshape(B_pad, 1)[:B]


# --------------------------------------- main --------------------------------------------
if __name__ == "__main__":
    B, S = 8, 8
    key = jax.random.PRNGKey(0)
    k_ids, _ = jax.random.split(key)

    input_ids = jax.random.randint(k_ids, (B, S), 0, VOCAB, dtype=jnp.int32)
    token_type_ids = jnp.zeros((B, S), dtype=jnp.int32)
    attention_mask = (jnp.ones((B, S), dtype=jnp.int32)
                      .at[1, 6:].set(0)
                      .at[5, 4:].set(0))

    params = init_params(seed=0)

    fwd = jax.jit(model_level_forward)
    score = jax.block_until_ready(fwd(params, input_ids, attention_mask, token_type_ids))

    assert score.shape == (B, 1), score.shape
    assert bool(jnp.all(jnp.isfinite(score)))
    assert bool(jnp.all((score >= 0.0) & (score <= 1.0)))
    print("KERNEL_OK")
</pallas_src>

<mosaic_0001>
module attributes {stable_mosaic.version = 11 : i64} {
  func.func @_fused_forward_kernel(%arg0: i32, %arg1: memref<4x3x8xi32, #tpu.memory_space<vmem>>, %arg2: memref<118x32xf32, #tpu.memory_space<vmem>>, %arg3: memref<2x32x192xf32, #tpu.memory_space<vmem>>, %arg4: memref<2x64x32xf32, #tpu.memory_space<vmem>>, %arg5: memref<2x8x96xf32, #tpu.memory_space<vmem>>, %arg6: memref<37x32xf32, #tpu.memory_space<vmem>>, %arg7: memref<1x4x1xf32, #tpu.memory_space<vmem>>) attributes {dimension_semantics = [#tpu.dimension_semantics<parallel>], iteration_bounds = array<i64: 2>, scalar_prefetch = 0 : i64, scratch_operands = 0 : i64, tpu.core_type = #tpu.core_type<tc>, window_params = [{transform_indices = @transform_0, window_bounds = array<i64: 4, 3, 8>}, {pipeline_mode = #tpu.pipeline_mode<synchronous>, transform_indices = @transform_1, window_bounds = array<i64: 118, 32>}, {pipeline_mode = #tpu.pipeline_mode<synchronous>, transform_indices = @transform_2, window_bounds = array<i64: 2, 32, 192>}, {pipeline_mode = #tpu.pipeline_mode<synchronous>, transform_indices = @transform_3, window_bounds = array<i64: 2, 64, 32>}, {pipeline_mode = #tpu.pipeline_mode<synchronous>, transform_indices = @transform_4, window_bounds = array<i64: 2, 8, 96>}, {pipeline_mode = #tpu.pipeline_mode<synchronous>, transform_indices = @transform_5, window_bounds = array<i64: 37, 32>}, {transform_indices = @transform_6, window_bounds = array<i64: 1, 4, 1>}]} {
    %c0 = arith.constant 0 : index
    %c0_0 = arith.constant 0 : index
    %c0_1 = arith.constant 0 : index
    %0 = vector.load %arg1[%c0, %c0_0, %c0_1] : memref<4x3x8xi32, #tpu.memory_space<vmem>>, vector<4x3x8xi32>
    %1 = vector.extract_strided_slice %0 {offsets = [0, 0, 0], sizes = [4, 1, 8], strides = [1, 1, 1]} : vector<4x3x8xi32> to vector<4x1x8xi32>
    %2 = vector.shape_cast %1 : vector<4x1x8xi32> to vector<4x8xi32>
    %3 = vector.extract_strided_slice %0 {offsets = [0, 1, 0], sizes = [4, 1, 8], strides = [1, 1, 1]} : vector<4x3x8xi32> to vector<4x1x8xi32>
    %4 = vector.shape_cast %3 : vector<4x1x8xi32> to vector<4x8xi32>
    %5 = vector.extract_strided_slice %0 {offsets = [0, 2, 0], sizes = [4, 1, 8], strides = [1, 1, 1]} : vector<4x3x8xi32> to vector<4x1x8xi32>
    %6 = vector.shape_cast %5 : vector<4x1x8xi32> to vector<4x8xi32>
    %7 = arith.sitofp %6 : vector<4x8xi32> to vector<4x8xf32>
    %8 = tpu.iota {dimensions = array<i32: 2>} : vector<4x8x118xi32>
    %9 = tpu.iota {dimensions = array<i32: 1>} : vector<4x8x118xi32>
    %10 = vector.shape_cast %2 : vector<4x8xi32> to vector<4x8x1xi32>
    %11 = vector.broadcast %10 : vector<4x8x1xi32> to vector<4x8x118xi32>
    %12 = arith.cmpi eq, %8, %11 : vector<4x8x118xi32>
    %c100_i32 = arith.constant 100 : i32
    %13 = vector.broadcast %c100_i32 : i32 to vector<4x8x118xi32>
    %14 = arith.addi %13, %9 : vector<4x8x118xi32>
    %15 = arith.cmpi eq, %8, %14 : vector<4x8x118xi32>
    %16 = arith.ori %12, %15 : vector<4x8x118xi1>
    %17 = vector.shape_cast %4 : vector<4x8xi32> to vector<4x8x1xi32>
    %c116_i32 = arith.constant 116 : i32
    %18 = vector.broadcast %c116_i32 : i32 to vector<4x8x1xi32>
    %19 = arith.addi %18, %17 : vector<4x8x1xi32>
    %20 = vector.broadcast %19 : vector<4x8x1xi32> to vector<4x8x118xi32>
    %21 = arith.cmpi eq, %8, %20 : vector<4x8x118xi32>
    %22 = arith.ori %16, %21 : vector<4x8x118xi1>
    %23 = arith.extui %22 : vector<4x8x118xi1> to vector<4x8x118xi32>
    %24 = arith.sitofp %23 : vector<4x8x118xi32> to vector<4x8x118xf32>
    %25 = vector.shape_cast %24 : vector<4x8x118xf32> to vector<32x118xf32>
    %c0_2 = arith.constant 0 : index
    %c0_3 = arith.constant 0 : index
    %26 = vector.load %arg2[%c0_2, %c0_3] : memref<118x32xf32, #tpu.memory_space<vmem>>, vector<118x32xf32>
    %cst = arith.constant dense<0.000000e+00> : vector<32x32xf32>
    %27 = tpu.matmul %25, %26, %cst {dimension_numbers = #tpu.dot_dimension_numbers<[1], [0], [0], [1], [0, 0, 1, 1], [], []>} : vector<32x118xf32>, vector<118x32xf32>, vector<32x32xf32> -> vector<32x32xf32>
    %c0_4 = arith.constant 0 : index
    %c0_5 = arith.constant 0 : index
    %28 = vector.load %arg6[%c0_4, %c0_5] : memref<37x32xf32, #tpu.memory_space<vmem>>, vector<37x32xf32>
    %29 = vector.extract_strided_slice %28 {offsets = [34, 0], sizes = [1, 32], strides = [1, 1]} : vector<37x32xf32> to vector<1x32xf32>
    %30 = vector.extract_strided_slice %28 {offsets = [35, 0], sizes = [1, 32], strides = [1, 1]} : vector<37x32xf32> to vector<1x32xf32>
    %cst_6 = arith.constant dense<0.000000e+00> : vector<32xf32>
    %31 = vector.multi_reduction <add>, %27, %cst_6 [1] : vector<32x32xf32> to vector<32xf32>
    %32 = vector.shape_cast %31 : vector<32xf32> to vector<32x1xf32>
    %cst_7 = arith.constant 3.200000e+01 : f32
    %33 = vector.broadcast %cst_7 : f32 to vector<32x1xf32>
    %34 = arith.divf %32, %33 : vector<32x1xf32>
    %35 = vector.broadcast %34 : vector<32x1xf32> to vector<32x32xf32>
    %36 = arith.subf %27, %35 : vector<32x32xf32>
    %37 = arith.mulf %36, %36 : vector<32x32xf32>
    %cst_8 = arith.constant dense<0.000000e+00> : vector<32xf32>
    %38 = vector.multi_reduction <add>, %37, %cst_8 [1] : vector<32x32xf32> to vector<32xf32>
    %39 = vector.shape_cast %38 : vector<32xf32> to vector<32x1xf32>
    %cst_9 = arith.constant 3.200000e+01 : f32
    %40 = vector.broadcast %cst_9 : f32 to vector<32x1xf32>
    %41 = arith.divf %39, %40 : vector<32x1xf32>
    %cst_10 = arith.constant 9.99999996E-13 : f32
    %42 = vector.broadcast %cst_10 : f32 to vector<32x1xf32>
    %43 = arith.addf %41, %42 : vector<32x1xf32>
    %44 = math.rsqrt %43 : vector<32x1xf32>
    %45 = vector.broadcast %44 : vector<32x1xf32> to vector<32x32xf32>
    %46 = arith.mulf %36, %45 : vector<32x32xf32>
    %47 = vector.broadcast %29 : vector<1x32xf32> to vector<32x32xf32>
    %48 = arith.mulf %46, %47 : vector<32x32xf32>
    %49 = vector.broadcast %30 : vector<1x32xf32> to vector<32x32xf32>
    %50 = arith.addf %48, %49 : vector<32x32xf32>
    %cst_11 = arith.constant 1.000000e+00 : f32
    %51 = vector.broadcast %cst_11 : f32 to vector<4x8xf32>
    %52 = arith.subf %51, %7 : vector<4x8xf32>
    %cst_12 = arith.constant -1.000000e+09 : f32
    %53 = vector.broadcast %cst_12 : f32 to vector<4x8xf32>
    %54 = arith.mulf %52, %53 : vector<4x8xf32>
    %55 = vector.shape_cast %54 : vector<4x8xf32> to vector<4x1x8xf32>
    %56 = vector.shape_cast %55 : vector<4x1x8xf32> to vector<4x1x8xf32>
    %57 = vector.broadcast %56 : vector<4x1x8xf32> to vector<4x8x8xf32>
    %c0_13 = arith.constant 0 : index
    %c0_14 = arith.constant 0 : index
    %c0_15 = arith.constant 0 : index
    %58 = vector.load %arg3[%c0_13, %c0_14, %c0_15] : memref<2x32x192xf32, #tpu.memory_space<vmem>>, vector<1x32x192xf32>
    %59 = vector.shape_cast %58 : vector<1x32x192xf32> to vector<32x192xf32>
    %60 = vector.extract_strided_slice %59 {offsets = [0, 0], sizes = [32, 96], strides = [1, 1]} : vector<32x192xf32> to vector<32x96xf32>
    %61 = vector.extract_strided_slice %59 {offsets = [0, 96], sizes = [32, 32], strides = [1, 1]} : vector<32x192xf32> to vector<32x32xf32>
    %62 = vector.extract_strided_slice %59 {offsets = [0, 128], sizes = [32, 64], strides = [1, 1]} : vector<32x192xf32> to vector<32x64xf32>
    %c0_16 = arith.constant 0 : index
    %c0_17 = arith.constant 0 : index
    %c0_18 = arith.constant 0 : index
    %63 = vector.load %arg4[%c0_16, %c0_17, %c0_18] : memref<2x64x32xf32, #tpu.memory_space<vmem>>, vector<1x64x32xf32>
    %64 = vector.shape_cast %63 : vector<1x64x32xf32> to vector<64x32xf32>
    %c0_19 = arith.constant 0 : index
    %c0_20 = arith.constant 0 : index
    %c0_21 = arith.constant 0 : index
    %65 = vector.load %arg5[%c0_19, %c0_20, %c0_21] : memref<2x8x96xf32, #tpu.memory_space<vmem>>, vector<1x8x96xf32>
    %66 = vector.shape_cast %65 : vector<1x8x96xf32> to vector<8x96xf32>
    %67 = vector.extract_strided_slice %66 {offsets = [0, 0], sizes = [1, 96], strides = [1, 1]} : vector<8x96xf32> to vector<1x96xf32>
    %68 = vector.extract_strided_slice %66 {offsets = [1, 0], sizes = [1, 32], strides = [1, 1]} : vector<8x96xf32> to vector<1x32xf32>
    %69 = vector.extract_strided_slice %66 {offsets = [2, 0], sizes = [1, 32], strides = [1, 1]} : vector<8x96xf32> to vector<1x32xf32>
    %70 = vector.extract_strided_slice %66 {offsets = [3, 0], sizes = [1, 32], strides = [1, 1]} : vector<8x96xf32> to vector<1x32xf32>
    %71 = vector.extract_strided_slice %66 {offsets = [4, 0], sizes = [1, 64], strides = [1, 1]} : vector<8x96xf32> to vector<1x64xf32>
    %72 = vector.extract_strided_slice %66 {offsets = [5, 0], sizes = [1, 32], strides = [1, 1]} : vector<8x96xf32> to vector<1x32xf32>
    %73 = vector.extract_strided_slice %66 {offsets = [6, 0], sizes = [1, 32], strides = [1, 1]} : vector<8x96xf32> to vector<1x32xf32>
    %74 = vector.extract_strided_slice %66 {offsets = [7, 0], sizes = [1, 32], strides = [1, 1]} : vector<8x96xf32> to vector<1x32xf32>
    %cst_22 = arith.constant dense<0.000000e+00> : vector<32x96xf32>
    %75 = tpu.matmul %50, %60, %cst_22 {dimension_numbers = #tpu.dot_dimension_numbers<[1], [0], [0], [1], [0, 0, 1, 1], [], []>} : vector<32x32xf32>, vector<32x96xf32>, vector<32x96xf32> -> vector<32x96xf32>
    %76 = vector.broadcast %67 : vector<1x96xf32> to vector<32x96xf32>
    %77 = arith.addf %75, %76 : vector<32x96xf32>
    %78 = vector.shape_cast %77 : vector<32x96xf32> to vector<4x8x96xf32>
    %79 = vector.extract_strided_slice %78 {offsets = [0, 0, 0], sizes = [4, 8, 16], strides = [1, 1, 1]} : vector<4x8x96xf32> to vector<4x8x16xf32>
    %80 = vector.extract_strided_slice %78 {offsets = [0, 0, 32], sizes = [4, 8, 16], strides = [1, 1, 1]} : vector<4x8x96xf32> to vector<4x8x16xf32>
    %81 = vector.extract_strided_slice %78 {offsets = [0, 0, 64], sizes = [4, 8, 16], strides = [1, 1, 1]} : vector<4x8x96xf32> to vector<4x8x16xf32>
    "tpu.trace_start"() <{level = 10 : i32, message = "bqd,bkd->bqk"}> : () -> ()
    %cst_23 = arith.constant dense<0.000000e+00> : vector<4x8x8xf32>
    %82 = tpu.matmul %79, %80, %cst_23 {dimension_numbers = #tpu.dot_dimension_numbers<[2], [2], [1], [1], [0, 0, 0, 1, 1, 1], [0], [0]>} : vector<4x8x16xf32>, vector<4x8x16xf32>, vector<4x8x8xf32> -> vector<4x8x8xf32>
    "tpu.trace_stop"() : () -> ()
    %cst_24 = arith.constant 2.500000e-01 : f32
    %83 = vector.broadcast %cst_24 : f32 to vector<4x8x8xf32>
    %84 = arith.mulf %82, %83 : vector<4x8x8xf32>
    %85 = arith.addf %84, %57 : vector<4x8x8xf32>
    %cst_25 = arith.constant dense<0xFF800000> : vector<4x8xf32>
    %86 = vector.multi_reduction <maximumf>, %85, %cst_25 [2] : vector<4x8x8xf32> to vector<4x8xf32>
    %87 = vector.shape_cast %86 : vector<4x8xf32> to vector<4x8x1xf32>
    %88 = vector.broadcast %87 : vector<4x8x1xf32> to vector<4x8x8xf32>
    %89 = arith.subf %85, %88 : vector<4x8x8xf32>
    %90 = math.exp %89 : vector<4x8x8xf32>
    %cst_26 = arith.constant dense<0.000000e+00> : vector<4x8xf32>
    %91 = vector.multi_reduction <add>, %90, %cst_26 [2] : vector<4x8x8xf32> to vector<4x8xf32>
    %92 = vector.shape_cast %91 : vector<4x8xf32> to vector<4x8x1xf32>
    %93 = tpu.reciprocal %92 {approx = true} : vector<4x8x1xf32> -> vector<4x8x1xf32>
    %94 = vector.broadcast %93 : vector<4x8x1xf32> to vector<4x8x8xf32>
    %95 = arith.mulf %90, %94 : vector<4x8x8xf32>
    "tpu.trace_start"() <{level = 10 : i32, message = "bqk,bkd->bqd"}> : () -> ()
    %cst_27 = arith.constant dense<0.000000e+00> : vector<4x8x16xf32>
    %96 = tpu.matmul %95, %81, %cst_27 {dimension_numbers = #tpu.dot_dimension_numbers<[2], [1], [1], [2], [0, 0, 0, 1, 1, 2], [0], [0]>} : vector<4x8x8xf32>, vector<4x8x16xf32>, vector<4x8x16xf32> -> vector<4x8x16xf32>
    "tpu.trace_stop"() : () -> ()
    %97 = vector.extract_strided_slice %78 {offsets = [0, 0, 16], sizes = [4, 8, 16], strides = [1, 1, 1]} : vector<4x8x96xf32> to vector<4x8x16xf32>
    %98 = vector.extract_strided_slice %78 {offsets = [0, 0, 48], sizes = [4, 8, 16], strides = [1, 1, 1]} : vector<4x8x96xf32> to vector<4x8x16xf32>
    %99 = vector.extract_strided_slice %78 {offsets = [0, 0, 80], sizes = [4, 8, 16], strides = [1, 1, 1]} : vector<4x8x96xf32> to vector<4x8x16xf32>
    "tpu.trace_start"() <{level = 10 : i32, message = "bqd,bkd->bqk"}> : () -> ()
    %cst_28 = arith.constant dense<0.000000e+00> : vector<4x8x8xf32>
    %100 = tpu.matmul %97, %98, %cst_28 {dimension_numbers = #tpu.dot_dimension_numbers<[2], [2], [1], [1], [0, 0, 0, 1, 1, 1], [0], [0]>} : vector<4x8x16xf32>, vector<4x8x16xf32>, vector<4x8x8xf32> -> vector<4x8x8xf32>
    "tpu.trace_stop"() : () -> ()
    %cst_29 = arith.constant 2.500000e-01 : f32
    %101 = vector.broadcast %cst_29 : f32 to vector<4x8x8xf32>
    %102 = arith.mulf %100, %101 : vector<4x8x8xf32>
    %103 = arith.addf %102, %57 : vector<4x8x8xf32>
    %cst_30 = arith.constant dense<0xFF800000> : vector<4x8xf32>
    %104 = vector.multi_reduction <maximumf>, %103, %cst_30 [2] : vector<4x8x8xf32> to vector<4x8xf32>
    %105 = vector.shape_cast %104 : vector<4x8xf32> to vector<4x8x1xf32>
    %106 = vector.broadcast %105 : vector<4x8x1xf32> to vector<4x8x8xf32>
    %107 = arith.subf %103, %106 : vector<4x8x8xf32>
    %108 = math.exp %107 : vector<4x8x8xf32>
    %cst_31 = arith.constant dense<0.000000e+00> : vector<4x8xf32>
    %109 = vector.multi_reduction <add>, %108, %cst_31 [2] : vector<4x8x8xf32> to vector<4x8xf32>
    %110 = vector.shape_cast %109 : vector<4x8xf32> to vector<4x8x1xf32>
    %111 = tpu.reciprocal %110 {approx = true} : vector<4x8x1xf32> -> vector<4x8x1xf32>
    %112 = vector.broadcast %111 : vector<4x8x1xf32> to vector<4x8x8xf32>
    %113 = arith.mulf %108, %112 : vector<4x8x8xf32>
    "tpu.trace_start"() <{level = 10 : i32, message = "bqk,bkd->bqd"}> : () -> ()
    %cst_32 = arith.constant dense<0.000000e+00> : vector<4x8x16xf32>
    %114 = tpu.matmul %113, %99, %cst_32 {dimension_numbers = #tpu.dot_dimension_numbers<[2], [1], [1], [2], [0, 0, 0, 1, 1, 2], [0], [0]>} : vector<4x8x8xf32>, vector<4x8x16xf32>, vector<4x8x16xf32> -> vector<4x8x16xf32>
    "tpu.trace_stop"() : () -> ()
    %115 = tpu.concatenate %96, %114 in 2 : vector<4x8x16xf32>, vector<4x8x16xf32> -> vector<4x8x32xf32>
    %116 = vector.shape_cast %115 : vector<4x8x32xf32> to vector<32x32xf32>
    %cst_33 = arith.constant dense<0.000000e+00> : vector<32x32xf32>
    %117 = tpu.matmul %116, %61, %cst_33 {dimension_numbers = #tpu.dot_dimension_numbers<[1], [0], [0], [1], [0, 0, 1, 1], [], []>} : vector<32x32xf32>, vector<32x32xf32>, vector<32x32xf32> -> vector<32x32xf32>
    %118 = vector.broadcast %68 : vector<1x32xf32> to vector<32x32xf32>
    %119 = arith.addf %117, %118 : vector<32x32xf32>
    %120 = arith.addf %119, %50 : vector<32x32xf32>
    %cst_34 = arith.constant dense<0.000000e+00> : vector<32xf32>
    %121 = vector.multi_reduction <add>, %120, %cst_34 [1] : vector<32x32xf32> to vector<32xf32>
    %122 = vector.shape_cast %121 : vector<32xf32> to vector<32x1xf32>
    %cst_35 = arith.constant 3.200000e+01 : f32
    %123 = vector.broadcast %cst_35 : f32 to vector<32x1xf32>
    %124 = arith.divf %122, %123 : vector<32x1xf32>
    %125 = vector.broadcast %124 : vector<32x1xf32> to vector<32x32xf32>
    %126 = arith.subf %120, %125 : vector<32x32xf32>
    %127 = arith.mulf %126, %126 : vector<32x32xf32>
    %cst_36 = arith.constant dense<0.000000e+00> : vector<32xf32>
    %128 = vector.multi_reduction <add>, %127, %cst_36 [1] : vector<32x32xf32> to vector<32xf32>
    %129 = vector.shape_cast %128 : vector<32xf32> to vector<32x1xf32>
    %cst_37 = arith.constant 3.200000e+01 : f32
    %130 = vector.broadcast %cst_37 : f32 to vector<32x1xf32>
    %131 = arith.divf %129, %130 : vector<32x1xf32>
    %cst_38 = arith.constant 9.99999996E-13 : f32
    %132 = vector.broadcast %cst_38 : f32 to vector<32x1xf32>
    %133 = arith.addf %131, %132 : vector<32x1xf32>
    %134 = math.rsqrt %133 : vector<32x1xf32>
    %135 = vector.broadcast %134 : vector<32x1xf32> to vector<32x32xf32>
    %136 = arith.mulf %126, %135 : vector<32x32xf32>
    %137 = vector.broadcast %69 : vector<1x32xf32> to vector<32x32xf32>
    %138 = arith.mulf %136, %137 : vector<32x32xf32>
    %139 = vector.broadcast %70 : vector<1x32xf32> to vector<32x32xf32>
    %140 = arith.addf %138, %139 : vector<32x32xf32>
    %cst_39 = arith.constant dense<0.000000e+00> : vector<32x64xf32>
    %141 = tpu.matmul %140, %62, %cst_39 {dimension_numbers = #tpu.dot_dimension_numbers<[1], [0], [0], [1], [0, 0, 1, 1], [], []>} : vector<32x32xf32>, vector<32x64xf32>, vector<32x64xf32> -> vector<32x64xf32>
    %142 = vector.broadcast %71 : vector<1x64xf32> to vector<32x64xf32>
    %143 = arith.addf %141, %142 : vector<32x64xf32>
    %cst_40 = arith.constant 5.000000e-01 : f32
    %144 = vector.broadcast %cst_40 : f32 to vector<32x64xf32>
    %145 = arith.mulf %144, %143 : vector<32x64xf32>
    %cst_41 = arith.constant 4.471500e-02 : f32
    %146 = vector.broadcast %cst_41 : f32 to vector<32x64xf32>
    %147 = arith.mulf %146, %143 : vector<32x64xf32>
    %148 = arith.mulf %147, %143 : vector<32x64xf32>
    %149 = arith.mulf %148, %143 : vector<32x64xf32>
    %150 = arith.addf %143, %149 : vector<32x64xf32>
    %cst_42 = arith.constant 0.797884583 : f32
    %151 = vector.broadcast %cst_42 : f32 to vector<32x64xf32>
    %152 = arith.mulf %151, %150 : vector<32x64xf32>
    %153 = math.tanh %152 : vector<32x64xf32>
    %cst_43 = arith.constant 1.000000e+00 : f32
    %154 = vector.broadcast %cst_43 : f32 to vector<32x64xf32>
    %155 = arith.addf %154, %153 : vector<32x64xf32>
    %156 = arith.mulf %145, %155 : vector<32x64xf32>
    %cst_44 = arith.constant dense<0.000000e+00> : vector<32x32xf32>
    %157 = tpu.matmul %156, %64, %cst_44 {dimension_numbers = #tpu.dot_dimension_numbers<[1], [0], [0], [1], [0, 0, 1, 1], [], []>} : vector<32x64xf32>, vector<64x32xf32>, vector<32x32xf32> -> vector<32x32xf32>
    %158 = vector.broadcast %72 : vector<1x32xf32> to vector<32x32xf32>
    %159 = arith.addf %157, %158 : vector<32x32xf32>
    %160 = arith.addf %159, %140 : vector<32x32xf32>
    %cst_45 = arith.constant dense<0.000000e+00> : vector<32xf32>
    %161 = vector.multi_reduction <add>, %160, %cst_45 [1] : vector<32x32xf32> to vector<32xf32>
    %162 = vector.shape_cast %161 : vector<32xf32> to vector<32x1xf32>
    %cst_46 = arith.constant 3.200000e+01 : f32
    %163 = vector.broadcast %cst_46 : f32 to vector<32x1xf32>
    %164 = arith.divf %162, %163 : vector<32x1xf32>
    %165 = vector.broadcast %164 : vector<32x1xf32> to vector<32x32xf32>
    %166 = arith.subf %160, %165 : vector<32x32xf32>
    %167 = arith.mulf %166, %166 : vector<32x32xf32>
    %cst_47 = arith.constant dense<0.000000e+00> : vector<32xf32>
    %168 = vector.multi_reduction <add>, %167, %cst_47 [1] : vector<32x32xf32> to vector<32xf32>
    %169 = vector.shape_cast %168 : vector<32xf32> to vector<32x1xf32>
    %cst_48 = arith.constant 3.200000e+01 : f32
    %170 = vector.broadcast %cst_48 : f32 to vector<32x1xf32>
    %171 = arith.divf %169, %170 : vector<32x1xf32>
    %cst_49 = arith.constant 9.99999996E-13 : f32
    %172 = vector.broadcast %cst_49 : f32 to vector<32x1xf32>
    %173 = arith.addf %171, %172 : vector<32x1xf32>
    %174 = math.rsqrt %173 : vector<32x1xf32>
    %175 = vector.broadcast %174 : vector<32x1xf32> to vector<32x32xf32>
    %176 = arith.mulf %166, %175 : vector<32x32xf32>
    %177 = vector.broadcast %73 : vector<1x32xf32> to vector<32x32xf32>
    %178 = arith.mulf %176, %177 : vector<32x32xf32>
    %179 = vector.broadcast %74 : vector<1x32xf32> to vector<32x32xf32>
    %180 = arith.addf %178, %179 : vector<32x32xf32>
    %c1 = arith.constant 1 : index
    %c0_50 = arith.constant 0 : index
    %c0_51 = arith.constant 0 : index
    %181 = vector.load %arg3[%c1, %c0_50, %c0_51] : memref<2x32x192xf32, #tpu.memory_space<vmem>>, vector<1x32x192xf32>
    %182 = vector.shape_cast %181 : vector<1x32x192xf32> to vector<32x192xf32>
    %183 = vector.extract_strided_slice %182 {offsets = [0, 0], sizes = [32, 96], strides = [1, 1]} : vector<32x192xf32> to vector<32x96xf32>
    %184 = vector.extract_strided_slice %182 {offsets = [0, 96], sizes = [32, 32], strides = [1, 1]} : vector<32x192xf32> to vector<32x32xf32>
    %185 = vector.extract_strided_slice %182 {offsets = [0, 128], sizes = [32, 64], strides = [1, 1]} : vector<32x192xf32> to vector<32x64xf32>
    %c1_52 = arith.constant 1 : index
    %c0_53 = arith.constant 0 : index
    %c0_54 = arith.constant 0 : index
    %186 = vector.load %arg4[%c1_52, %c0_53, %c0_54] : memref<2x64x32xf32, #tpu.memory_space<vmem>>, vector<1x64x32xf32>
    %187 = vector.shape_cast %186 : vector<1x64x32xf32> to vector<64x32xf32>
    %c1_55 = arith.constant 1 : index
    %c0_56 = arith.constant 0 : index
    %c0_57 = arith.constant 0 : index
    %188 = vector.load %arg5[%c1_55, %c0_56, %c0_57] : memref<2x8x96xf32, #tpu.memory_space<vmem>>, vector<1x8x96xf32>
    %189 = vector.shape_cast %188 : vector<1x8x96xf32> to vector<8x96xf32>
    %190 = vector.extract_strided_slice %189 {offsets = [0, 0], sizes = [1, 96], strides = [1, 1]} : vector<8x96xf32> to vector<1x96xf32>
    %191 = vector.extract_strided_slice %189 {offsets = [1, 0], sizes = [1, 32], strides = [1, 1]} : vector<8x96xf32> to vector<1x32xf32>
    %192 = vector.extract_strided_slice %189 {offsets = [2, 0], sizes = [1, 32], strides = [1, 1]} : vector<8x96xf32> to vector<1x32xf32>
    %193 = vector.extract_strided_slice %189 {offsets = [3, 0], sizes = [1, 32], strides = [1, 1]} : vector<8x96xf32> to vector<1x32xf32>
    %194 = vector.extract_strided_slice %189 {offsets = [4, 0], sizes = [1, 64], strides = [1, 1]} : vector<8x96xf32> to vector<1x64xf32>
    %195 = vector.extract_strided_slice %189 {offsets = [5, 0], sizes = [1, 32], strides = [1, 1]} : vector<8x96xf32> to vector<1x32xf32>
    %196 = vector.extract_strided_slice %189 {offsets = [6, 0], sizes = [1, 32], strides = [1, 1]} : vector<8x96xf32> to vector<1x32xf32>
    %197 = vector.extract_strided_slice %189 {offsets = [7, 0], sizes = [1, 32], strides = [1, 1]} : vector<8x96xf32> to vector<1x32xf32>
    %cst_58 = arith.constant dense<0.000000e+00> : vector<32x96xf32>
    %198 = tpu.matmul %180, %183, %cst_58 {dimension_numbers = #tpu.dot_dimension_numbers<[1], [0], [0], [1], [0, 0, 1, 1], [], []>} : vector<32x32xf32>, vector<32x96xf32>, vector<32x96xf32> -> vector<32x96xf32>
    %199 = vector.broadcast %190 : vector<1x96xf32> to vector<32x96xf32>
    %200 = arith.addf %198, %199 : vector<32x96xf32>
    %201 = vector.shape_cast %200 : vector<32x96xf32> to vector<4x8x96xf32>
    %202 = vector.extract_strided_slice %201 {offsets = [0, 0, 0], sizes = [4, 8, 16], strides = [1, 1, 1]} : vector<4x8x96xf32> to vector<4x8x16xf32>
    %203 = vector.extract_strided_slice %201 {offsets = [0, 0, 32], sizes = [4, 8, 16], strides = [1, 1, 1]} : vector<4x8x96xf32> to vector<4x8x16xf32>
    %204 = vector.extract_strided_slice %201 {offsets = [0, 0, 64], sizes = [4, 8, 16], strides = [1, 1, 1]} : vector<4x8x96xf32> to vector<4x8x16xf32>
    "tpu.trace_start"() <{level = 10 : i32, message = "bqd,bkd->bqk"}> : () -> ()
    %cst_59 = arith.constant dense<0.000000e+00> : vector<4x8x8xf32>
    %205 = tpu.matmul %202, %203, %cst_59 {dimension_numbers = #tpu.dot_dimension_numbers<[2], [2], [1], [1], [0, 0, 0, 1, 1, 1], [0], [0]>} : vector<4x8x16xf32>, vector<4x8x16xf32>, vector<4x8x8xf32> -> vector<4x8x8xf32>
    "tpu.trace_stop"() : () -> ()
    %cst_60 = arith.constant 2.500000e-01 : f32
    %206 = vector.broadcast %cst_60 : f32 to vector<4x8x8xf32>
    %207 = arith.mulf %205, %206 : vector<4x8x8xf32>
    %208 = arith.addf %207, %57 : vector<4x8x8xf32>
    %cst_61 = arith.constant dense<0xFF800000> : vector<4x8xf32>
    %209 = vector.multi_reduction <maximumf>, %208, %cst_61 [2] : vector<4x8x8xf32> to vector<4x8xf32>
    %210 = vector.shape_cast %209 : vector<4x8xf32> to vector<4x8x1xf32>
    %211 = vector.broadcast %210 : vector<4x8x1xf32> to vector<4x8x8xf32>
    %212 = arith.subf %208, %211 : vector<4x8x8xf32>
    %213 = math.exp %212 : vector<4x8x8xf32>
    %cst_62 = arith.constant dense<0.000000e+00> : vector<4x8xf32>
    %214 = vector.multi_reduction <add>, %213, %cst_62 [2] : vector<4x8x8xf32> to vector<4x8xf32>
    %215 = vector.shape_cast %214 : vector<4x8xf32> to vector<4x8x1xf32>
    %216 = tpu.reciprocal %215 {approx = true} : vector<4x8x1xf32> -> vector<4x8x1xf32>
    %217 = vector.broadcast %216 : vector<4x8x1xf32> to vector<4x8x8xf32>
    %218 = arith.mulf %213, %217 : vector<4x8x8xf32>
    "tpu.trace_start"() <{level = 10 : i32, message = "bqk,bkd->bqd"}> : () -> ()
    %cst_63 = arith.constant dense<0.000000e+00> : vector<4x8x16xf32>
    %219 = tpu.matmul %218, %204, %cst_63 {dimension_numbers = #tpu.dot_dimension_numbers<[2], [1], [1], [2], [0, 0, 0, 1, 1, 2], [0], [0]>} : vector<4x8x8xf32>, vector<4x8x16xf32>, vector<4x8x16xf32> -> vector<4x8x16xf32>
    "tpu.trace_stop"() : () -> ()
    %220 = vector.extract_strided_slice %201 {offsets = [0, 0, 16], sizes = [4, 8, 16], strides = [1, 1, 1]} : vector<4x8x96xf32> to vector<4x8x16xf32>
    %221 = vector.extract_strided_slice %201 {offsets = [0, 0, 48], sizes = [4, 8, 16], strides = [1, 1, 1]} : vector<4x8x96xf32> to vector<4x8x16xf32>
    %222 = vector.extract_strided_slice %201 {offsets = [0, 0, 80], sizes = [4, 8, 16], strides = [1, 1, 1]} : vector<4x8x96xf32> to vector<4x8x16xf32>
    "tpu.trace_start"() <{level = 10 : i32, message = "bqd,bkd->bqk"}> : () -> ()
    %cst_64 = arith.constant dense<0.000000e+00> : vector<4x8x8xf32>
    %223 = tpu.matmul %220, %221, %cst_64 {dimension_numbers = #tpu.dot_dimension_numbers<[2], [2], [1], [1], [0, 0, 0, 1, 1, 1], [0], [0]>} : vector<4x8x16xf32>, vector<4x8x16xf32>, vector<4x8x8xf32> -> vector<4x8x8xf32>
    "tpu.trace_stop"() : () -> ()
    %cst_65 = arith.constant 2.500000e-01 : f32
    %224 = vector.broadcast %cst_65 : f32 to vector<4x8x8xf32>
    %225 = arith.mulf %223, %224 : vector<4x8x8xf32>
    %226 = arith.addf %225, %57 : vector<4x8x8xf32>
    %cst_66 = arith.constant dense<0xFF800000> : vector<4x8xf32>
    %227 = vector.multi_reduction <maximumf>, %226, %cst_66 [2] : vector<4x8x8xf32> to vector<4x8xf32>
    %228 = vector.shape_cast %227 : vector<4x8xf32> to vector<4x8x1xf32>
    %229 = vector.broadcast %228 : vector<4x8x1xf32> to vector<4x8x8xf32>
    %230 = arith.subf %226, %229 : vector<4x8x8xf32>
    %231 = math.exp %230 : vector<4x8x8xf32>
    %cst_67 = arith.constant dense<0.000000e+00> : vector<4x8xf32>
    %232 = vector.multi_reduction <add>, %231, %cst_67 [2] : vector<4x8x8xf32> to vector<4x8xf32>
    %233 = vector.shape_cast %232 : vector<4x8xf32> to vector<4x8x1xf32>
    %234 = tpu.reciprocal %233 {approx = true} : vector<4x8x1xf32> -> vector<4x8x1xf32>
    %235 = vector.broadcast %234 : vector<4x8x1xf32> to vector<4x8x8xf32>
    %236 = arith.mulf %231, %235 : vector<4x8x8xf32>
    "tpu.trace_start"() <{level = 10 : i32, message = "bqk,bkd->bqd"}> : () -> ()
    %cst_68 = arith.constant dense<0.000000e+00> : vector<4x8x16xf32>
    %237 = tpu.matmul %236, %222, %cst_68 {dimension_numbers = #tpu.dot_dimension_numbers<[2], [1], [1], [2], [0, 0, 0, 1, 1, 2], [0], [0]>} : vector<4x8x8xf32>, vector<4x8x16xf32>, vector<4x8x16xf32> -> vector<4x8x16xf32>
    "tpu.trace_stop"() : () -> ()
    %238 = tpu.concatenate %219, %237 in 2 : vector<4x8x16xf32>, vector<4x8x16xf32> -> vector<4x8x32xf32>
    %239 = vector.shape_cast %238 : vector<4x8x32xf32> to vector<32x32xf32>
    %cst_69 = arith.constant dense<0.000000e+00> : vector<32x32xf32>
    %240 = tpu.matmul %239, %184, %cst_69 {dimension_numbers = #tpu.dot_dimension_numbers<[1], [0], [0], [1], [0, 0, 1, 1], [], []>} : vector<32x32xf32>, vector<32x32xf32>, vector<32x32xf32> -> vector<32x32xf32>
    %241 = vector.broadcast %191 : vector<1x32xf32> to vector<32x32xf32>
    %242 = arith.addf %240, %241 : vector<32x32xf32>
    %243 = arith.addf %242, %180 : vector<32x32xf32>
    %cst_70 = arith.constant dense<0.000000e+00> : vector<32xf32>
    %244 = vector.multi_reduction <add>, %243, %cst_70 [1] : vector<32x32xf32> to vector<32xf32>
    %245 = vector.shape_cast %244 : vector<32xf32> to vector<32x1xf32>
    %cst_71 = arith.constant 3.200000e+01 : f32
    %246 = vector.broadcast %cst_71 : f32 to vector<32x1xf32>
    %247 = arith.divf %245, %246 : vector<32x1xf32>
    %248 = vector.broadcast %247 : vector<32x1xf32> to vector<32x32xf32>
    %249 = arith.subf %243, %248 : vector<32x32xf32>
    %250 = arith.mulf %249, %249 : vector<32x32xf32>
    %cst_72 = arith.constant dense<0.000000e+00> : vector<32xf32>
    %251 = vector.multi_reduction <add>, %250, %cst_72 [1] : vector<32x32xf32> to vector<32xf32>
    %252 = vector.shape_cast %251 : vector<32xf32> to vector<32x1xf32>
    %cst_73 = arith.constant 3.200000e+01 : f32
    %253 = vector.broadcast %cst_73 : f32 to vector<32x1xf32>
    %254 = arith.divf %252, %253 : vector<32x1xf32>
    %cst_74 = arith.constant 9.99999996E-13 : f32
    %255 = vector.broadcast %cst_74 : f32 to vector<32x1xf32>
    %256 = arith.addf %254, %255 : vector<32x1xf32>
    %257 = math.rsqrt %256 : vector<32x1xf32>
    %258 = vector.broadcast %257 : vector<32x1xf32> to vector<32x32xf32>
    %259 = arith.mulf %249, %258 : vector<32x32xf32>
    %260 = vector.broadcast %192 : vector<1x32xf32> to vector<32x32xf32>
    %261 = arith.mulf %259, %260 : vector<32x32xf32>
    %262 = vector.broadcast %193 : vector<1x32xf32> to vector<32x32xf32>
    %263 = arith.addf %261, %262 : vector<32x32xf32>
    %cst_75 = arith.constant dense<0.000000e+00> : vector<32x64xf32>
    %264 = tpu.matmul %263, %185, %cst_75 {dimension_numbers = #tpu.dot_dimension_numbers<[1], [0], [0], [1], [0, 0, 1, 1], [], []>} : vector<32x32xf32>, vector<32x64xf32>, vector<32x64xf32> -> vector<32x64xf32>
    %265 = vector.broadcast %194 : vector<1x64xf32> to vector<32x64xf32>
    %266 = arith.addf %264, %265 : vector<32x64xf32>
    %cst_76 = arith.constant 5.000000e-01 : f32
    %267 = vector.broadcast %cst_76 : f32 to vector<32x64xf32>
    %268 = arith.mulf %267, %266 : vector<32x64xf32>
    %cst_77 = arith.constant 4.471500e-02 : f32
    %269 = vector.broadcast %cst_77 : f32 to vector<32x64xf32>
    %270 = arith.mulf %269, %266 : vector<32x64xf32>
    %271 = arith.mulf %270, %266 : vector<32x64xf32>
    %272 = arith.mulf %271, %266 : vector<32x64xf32>
    %273 = arith.addf %266, %272 : vector<32x64xf32>
    %cst_78 = arith.constant 0.797884583 : f32
    %274 = vector.broadcast %cst_78 : f32 to vector<32x64xf32>
    %275 = arith.mulf %274, %273 : vector<32x64xf32>
    %276 = math.tanh %275 : vector<32x64xf32>
    %cst_79 = arith.constant 1.000000e+00 : f32
    %277 = vector.broadcast %cst_79 : f32 to vector<32x64xf32>
    %278 = arith.addf %277, %276 : vector<32x64xf32>
    %279 = arith.mulf %268, %278 : vector<32x64xf32>
    %cst_80 = arith.constant dense<0.000000e+00> : vector<32x32xf32>
    %280 = tpu.matmul %279, %187, %cst_80 {dimension_numbers = #tpu.dot_dimension_numbers<[1], [0], [0], [1], [0, 0, 1, 1], [], []>} : vector<32x64xf32>, vector<64x32xf32>, vector<32x32xf32> -> vector<32x32xf32>
    %281 = vector.broadcast %195 : vector<1x32xf32> to vector<32x32xf32>
    %282 = arith.addf %280, %281 : vector<32x32xf32>
    %283 = arith.addf %282, %263 : vector<32x32xf32>
    %cst_81 = arith.constant dense<0.000000e+00> : vector<32xf32>
    %284 = vector.multi_reduction <add>, %283, %cst_81 [1] : vector<32x32xf32> to vector<32xf32>
    %285 = vector.shape_cast %284 : vector<32xf32> to vector<32x1xf32>
    %cst_82 = arith.constant 3.200000e+01 : f32
    %286 = vector.broadcast %cst_82 : f32 to vector<32x1xf32>
    %287 = arith.divf %285, %286 : vector<32x1xf32>
    %288 = vector.broadcast %287 : vector<32x1xf32> to vector<32x32xf32>
    %289 = arith.subf %283, %288 : vector<32x32xf32>
    %290 = arith.mulf %289, %289 : vector<32x32xf32>
    %cst_83 = arith.constant dense<0.000000e+00> : vector<32xf32>
    %291 = vector.multi_reduction <add>, %290, %cst_83 [1] : vector<32x32xf32> to vector<32xf32>
    %292 = vector.shape_cast %291 : vector<32xf32> to vector<32x1xf32>
    %cst_84 = arith.constant 3.200000e+01 : f32
    %293 = vector.broadcast %cst_84 : f32 to vector<32x1xf32>
    %294 = arith.divf %292, %293 : vector<32x1xf32>
    %cst_85 = arith.constant 9.99999996E-13 : f32
    %295 = vector.broadcast %cst_85 : f32 to vector<32x1xf32>
    %296 = arith.addf %294, %295 : vector<32x1xf32>
    %297 = math.rsqrt %296 : vector<32x1xf32>
    %298 = vector.broadcast %297 : vector<32x1xf32> to vector<32x32xf32>
    %299 = arith.mulf %289, %298 : vector<32x32xf32>
    %300 = vector.broadcast %196 : vector<1x32xf32> to vector<32x32xf32>
    %301 = arith.mulf %299, %300 : vector<32x32xf32>
    %302 = vector.broadcast %197 : vector<1x32xf32> to vector<32x32xf32>
    %303 = arith.addf %301, %302 : vector<32x32xf32>
    %304 = vector.shape_cast %303 : vector<32x32xf32> to vector<4x8x32xf32>
    %305 = vector.extract_strided_slice %304 {offsets = [0, 0, 0], sizes = [4, 1, 32], strides = [1, 1, 1]} : vector<4x8x32xf32> to vector<4x1x32xf32>
    %306 = vector.shape_cast %305 : vector<4x1x32xf32> to vector<4x32xf32>
    %307 = vector.extract_strided_slice %28 {offsets = [0, 0], sizes = [32, 32], strides = [1, 1]} : vector<37x32xf32> to vector<32x32xf32>
    %308 = vector.extract_strided_slice %28 {offsets = [32, 0], sizes = [1, 32], strides = [1, 1]} : vector<37x32xf32> to vector<1x32xf32>
    %309 = vector.extract_strided_slice %28 {offsets = [33, 0], sizes = [1, 32], strides = [1, 1]} : vector<37x32xf32> to vector<1x32xf32>
    %310 = vector.extract_strided_slice %28 {offsets = [36, 0], sizes = [1, 1], strides = [1, 1]} : vector<37x32xf32> to vector<1x1xf32>
    %311 = vector.extract %310[0, 0] : f32 from vector<1x1xf32>
    %cst_86 = arith.constant dense<0.000000e+00> : vector<4x32xf32>
    %312 = tpu.matmul %306, %307, %cst_86 {dimension_numbers = #tpu.dot_dimension_numbers<[1], [0], [0], [1], [0, 0, 1, 1], [], []>} : vector<4x32xf32>, vector<32x32xf32>, vector<4x32xf32> -> vector<4x32xf32>
    %313 = vector.broadcast %308 : vector<1x32xf32> to vector<4x32xf32>
    %314 = arith.addf %312, %313 : vector<4x32xf32>
    %315 = math.tanh %314 : vector<4x32xf32>
    %316 = vector.broadcast %309 : vector<1x32xf32> to vector<4x32xf32>
    %317 = arith.mulf %315, %316 : vector<4x32xf32>
    %cst_87 = arith.constant dense<0.000000e+00> : vector<4xf32>
    %318 = vector.multi_reduction <add>, %317, %cst_87 [1] : vector<4x32xf32> to vector<4xf32>
    %319 = vector.shape_cast %318 : vector<4xf32> to vector<4x1xf32>
    %320 = vector.broadcast %311 : f32 to vector<4x1xf32>
    %321 = arith.addf %319, %320 : vector<4x1xf32>
    %cst_88 = arith.constant 0.000000e+00 : f32
    %322 = vector.broadcast %cst_88 : f32 to vector<4x1xf32>
    %323 = arith.subf %322, %321 : vector<4x1xf32>
    %324 = math.exp %323 : vector<4x1xf32>
    %cst_89 = arith.constant 1.000000e+00 : f32
    %325 = vector.broadcast %cst_89 : f32 to vector<4x1xf32>
    %326 = arith.addf %325, %324 : vector<4x1xf32>
    %cst_90 = arith.constant 1.000000e+00 : f32
    %327 = vector.broadcast %cst_90 : f32 to vector<4x1xf32>
    %328 = arith.divf %327, %326 : vector<4x1xf32>
    %c0_91 = arith.constant 0 : index
    %c0_92 = arith.constant 0 : index
    %c0_93 = arith.constant 0 : index
    %329 = vector.load %arg7[%c0_91, %c0_92, %c0_93] : memref<1x4x1xf32, #tpu.memory_space<vmem>>, vector<1x4x1xf32>
    %330 = vector.shape_cast %329 : vector<1x4x1xf32> to vector<4x1xf32>
    %331 = vector.shape_cast %328 : vector<4x1xf32> to vector<1x4x1xf32>
    tpu.vector_store %arg7[%c0_91, %c0_92, %c0_93], %331 {strides = array<i32>} : memref<1x4x1xf32, #tpu.memory_space<vmem>>, vector<1x4x1xf32>,
    return
  }
  func.func @transform_0(%arg0: i32) -> (i32, i32, i32) {
    %c0_i32 = arith.constant 0 : i32
    %c0_i32_0 = arith.constant 0 : i32
    %c0_i32_1 = arith.constant 0 : i32
    return %arg0, %c0_i32, %c0_i32_0 : i32, i32, i32
  }
  func.func @transform_1(%arg0: i32) -> (i32, i32) {
    %c0_i32 = arith.constant 0 : i32
    %c0_i32_0 = arith.constant 0 : i32
    %c0_i32_1 = arith.constant 0 : i32
    return %c0_i32, %c0_i32_0 : i32, i32
  }
  func.func @transform_2(%arg0: i32) -> (i32, i32, i32) {
    %c0_i32 = arith.constant 0 : i32
    %c0_i32_0 = arith.constant 0 : i32
    %c0_i32_1 = arith.constant 0 : i32
    %c0_i32_2 = arith.constant 0 : i32
    return %c0_i32, %c0_i32_0, %c0_i32_1 : i32, i32, i32
  }
  func.func @transform_3(%arg0: i32) -> (i32, i32, i32) {
    %c0_i32 = arith.constant 0 : i32
    %c0_i32_0 = arith.constant 0 : i32
    %c0_i32_1 = arith.constant 0 : i32
    %c0_i32_2 = arith.constant 0 : i32
    return %c0_i32, %c0_i32_0, %c0_i32_1 : i32, i32, i32
  }
  func.func @transform_4(%arg0: i32) -> (i32, i32, i32) {
    %c0_i32 = arith.constant 0 : i32
    %c0_i32_0 = arith.constant 0 : i32
    %c0_i32_1 = arith.constant 0 : i32
    %c0_i32_2 = arith.constant 0 : i32
    return %c0_i32, %c0_i32_0, %c0_i32_1 : i32, i32, i32
  }
  func.func @transform_5(%arg0: i32) -> (i32, i32) {
    %c0_i32 = arith.constant 0 : i32
    %c0_i32_0 = arith.constant 0 : i32
    %c0_i32_1 = arith.constant 0 : i32
    return %c0_i32, %c0_i32_0 : i32, i32
  }
  func.func @transform_6(%arg0: i32) -> (i32, i32, i32) {
    %c0_i32 = arith.constant 0 : i32
    %c0_i32_0 = arith.constant 0 : i32
    %c0_i32_1 = arith.constant 0 : i32
    return %arg0, %c0_i32, %c0_i32_0 : i32, i32, i32
  }
}

</mosaic_0001>

<bundles_post_ra>
// kernel: model_level_forward.1
= control target key start
LH: loop header
LB: loop body
LE: loop exit
PB: predicated region body
PF: predicated region fallthrough
CT: control target
= control target key end

     0   :  { %s5622_s21 = smov 0   ;;  %s6452_s0 = inlined_call_operand.vmem [shape: s32[8,3,8], index: 0, kind: input, shape index: {}]   ;;  %s6453_s1 = inlined_call_operand.vmem [shape: f32[118,32], index: 1, kind: input, shape index: {}]   ;;  %s6454_s2 = inlined_call_operand.vmem [shape: f32[2,32,192], index: 2, kind: input, shape index: {}]   ;;  %s6455_s3 = inlined_call_operand.vmem [shape: f32[2,64,32], index: 3, kind: input, shape index: {}]   ;;  %s6456_s4 = inlined_call_operand.vmem [shape: f32[2,8,96], index: 4, kind: input, shape index: {}]   ;;  %s6457_s5 = inlined_call_operand.vmem [shape: f32[37,32], index: 5, kind: input, shape index: {}]   ;;  %s6458_s6 = inlined_call_operand.vmem [shape: f32[2,4,1], index: 6, kind: output, shape index: {}]  }
   0x1 LB: > { %s5628_s22 = sadd.s32 4294967295, %s5575_s21   ;;  %p4678_p0 = scmp.ge.s32.totalorder %s5575_s21, 1  ;;  %s5575_s21 = sphi %s5622_s21, %s16_s21  }
   0x2   : > { %p213_p1 = scmp.lt.s32.totalorder %s5575_s21, 3 }
   0x4   : > { %p214_p2 = pnand %p4678_p0, %p213_p1 }
   0x5   : > { %s4679_s23 = sshll.u32 (!%p214_p2), %s5628_s22, 2  ;;  %v260_v0 = vlaneseq (!%p214_p2)  ;;  %v350_v1 = vld [vmem:[%s6453_s1] sm:$0xff] (!%p214_p2)  ;;  %v351_v2 = vld [vmem:[%s6453_s1 + $0x8] sm:$0xff] (!%p214_p2)  ;;  %v352_v3 = vld [vmem:[%s6453_s1 + $0x10] sm:$0xff] (!%p214_p2)  ;;  %vm378_vm0 = vcmask (!%p214_p2), 1045504   ;;  %v5577_v38 = vmov (!%p214_p2), 0.0  }
   0x6   : > { %217 = sbr.rel (%p214_p2) target bundleno = 7259 (0x1c5b), region = 44  ;;  %p243_p3 = scmp.lt.s32.totalorder (!%p214_p2), %s4679_s23, 7  ;;  %v5286_v4 = vpack.c.bf16 (!%p214_p2), %v351_v2, %v350_v1  ;;  %v353_v5 = vld [vmem:[%s6453_s1 + $0x18] sm:$0xff] (!%p214_p2)  ;;  %v354_v8 = vld [vmem:[%s6453_s1 + $0x20] sm:$0xff] (!%p214_p2)  ;;  %v355_v9 = vld [vmem:[%s6453_s1 + $0x28] sm:$0xff] (!%p214_p2)  ;;  %vm365_vm9 = vcmask (!%p214_p2), 965632  }
   0x7   : > { %v5646_v6 = vshrl.u32 (!%p214_p2), %v260_v0, 7  ;;  %v5290_v7 = vpack.c.bf16 (!%p214_p2), %v353_v5, %v352_v3  ;;  %v5294_v11 = vpack.c.bf16 (!%p214_p2), %v355_v9, %v354_v8  ;;  %v356_v13 = vld [vmem:[%s6453_s1 + $0x30] sm:$0xff] (!%p214_p2)  ;;  %v357_v14 = vld [vmem:[%s6453_s1 + $0x38] sm:$0xff] (!%p214_p2)  ;;  %v358_v22 = vld [vmem:[%s6453_s1 + $0x40] sm:$0xff] (!%p214_p2)  ;;  %v261_v42 = vand.u32 (!%p214_p2), 127, %v260_v0  ;;  %s5579_s26 = smov (!%p214_p2), 96  }
   0x8   : > { %5287 = vmatprep.subr.bf16.mxu0 (!%p214_p2), %v5286_v4  ;;  %v5298_v19 = vpack.c.bf16 (!%p214_p2), %v357_v14, %v356_v13  ;;  %v359_v23 = vld [vmem:[%s6453_s1 + $0x48] sm:$0xff] (!%p214_p2)  ;;  %v360_v28 = vld [vmem:[%s6453_s1 + $0x50] sm:$0xff] (!%p214_p2)  ;;  %v361_v29 = vld [vmem:[%s6453_s1 + $0x58] sm:$0xff] (!%p214_p2)  ;;  %s5580_s27 = smov (!%p214_p2), 64   ;;  %s5581_s28 = smov (!%p214_p2), 80  }
   0x9   : > { %v5655_v10 = vsub.s32 (!%p214_p2), 1, %v5646_v6  ;;  %5289 = vmatpush3.bf16.msra.mxu0 (!%p214_p2), %v5286_v4  ;;  %v5661_v12 = vsub.s32 (!%p214_p2), 0, %v5646_v6  ;;  %v5302_v25 = vpack.c.bf16 (!%p214_p2), %v359_v23, %v358_v22  ;;  %v5306_v31 = vpack.c.bf16 (!%p214_p2), %v361_v29, %v360_v28  ;;  %v362_v34 = vld [vmem:[%s6453_s1 + $0x60] sm:$0xff] (!%p214_p2)  ;;  %v363_v35 = vld [vmem:[%s6453_s1 + $0x68] sm:$0xff] (!%p214_p2)  ;;  %v364_v37 = vld [vmem:[%s6453_s1 + $0x70] sm:$0x3f] (!%p214_p2) }
   0xa   : > { %5291 = vmatprep.subr.bf16.mxu0 (!%p214_p2), %v5290_v7  ;;  %v5310_v36 = vpack.c.bf16 (!%p214_p2), %v363_v35, %v362_v34  ;;  %v296_v39 = vadd.s32 (!%p214_p2), 100, %v5646_v6  ;;  %v5745_v28 = vld [vmem:[%s6454_s2 + $0x10] sm:$0xff] (!%p214_p2)  ;;  %s5582_s29 = smov (!%p214_p2), 112   ;;  %s5583_s30 = smov (!%p214_p2), 48  }
   0xb   : > { %s5584_s7 = smov (!%p214_p2), 32   ;;  %s5585_s8 = smov (!%p214_p2), 16  }
   0xc   : > { %vm297_vm1 = vcmp.eq.s32.totalorder (!%p214_p2), %v261_v42, %v296_v39  ;;  %p248_p4 = scmp.lt.s32.totalorder (!%p214_p2), %s5628_s22, 1 }
   0xd   : > { %s6460_s23 = smov (!%p243_p3, %s4679_s23), 7  ;;  %5293 = vmatpush3.bf16.msra.mxu0 %v5290_v7 }
   0xe   : > { %s4680_s12 = sshll.u32 %s6460_s23, 2  ;;  %5295 = vmatprep.subr.bf16.mxu0 %v5294_v11  ;;  %s6462_s22 = smov (!%p248_p4, %s5628_s22), 1 }
   0xf   : > { %s246_s15 = scalar_lea.vmem %s6452_s0, %s4680_s12  ;;  %s4681_s25 = sshll.u32 %s6462_s22, 2 }
  0x10   : > { %v5669_v15 = vld [vmem:[%s246_s15 + $0x4] sm:$0x7]  ;;  %v5671_v16 = vld [vmem:[%s246_s15] sm:$0x7]  ;;  %v5687_v24 = vld [vmem:[%s246_s15 + $0x8] sm:$0x7]  ;;  %s251_s11 = scalar_lea.vmem %s6458_s6, %s4681_s25 }
  0x11   : > { %v312_v17 = vrot.slane %v5669_v15, %v5655_v10  ;;  %v305_v18 = vrot.slane %v5671_v16, %v5655_v10  ;;  %v274_v20 = vrot.slane %v5669_v15, %v5661_v12  ;;  %v267_v21 = vrot.slane %v5671_v16, %v5661_v12  ;;  %5297 = vmatpush3.bf16.msra.mxu0 %v5294_v11  ;;  %v5699_v30 = vld [vmem:[%s246_s15 + $0xc] sm:$0x7] }
  0x12   : > { %5299 = vmatprep.subr.bf16.mxu0 %v5298_v19  ;;  %v319_v26 = vrot.slane %v5687_v24, %v5655_v10  ;;  %v281_v27 = vrot.slane %v5687_v24, %v5661_v12  ;;  %v326_v32 = vrot.slane %v5699_v30, %v5655_v10  ;;  %v288_v33 = vrot.slane %v5699_v30, %v5661_v12 }
  0x13   : > { %314 = vbcast.lane.b32.xlu1 %v312_v17, 256  ;;  %307 = vbcast.lane.b32.xlu0 %v305_v18, 256 }
  0x15   : > { %5301 = vmatpush3.bf16.msra.mxu0 %v5298_v19 }
  0x16   : > { %5303 = vmatprep.subr.bf16.mxu0 %v5302_v25 }
  0x17   : > { %276 = vbcast.lane.b32.xlu1 %v274_v20, 256  ;;  %269 = vbcast.lane.b32.xlu0 %v267_v21, 256 }
  0x19   : > { %5305 = vmatpush3.bf16.msra.mxu0 %v5302_v25 }
  0x1a   : > { %5307 = vmatprep.subr.bf16.mxu0 %v5306_v31 }
  0x1b   : > { %321 = vbcast.lane.b32.xlu0 %v319_v26, 256  ;;  %283 = vbcast.lane.b32.xlu1 %v281_v27, 256  ;;  %v5740_v27 = vld [vmem:[%s6454_s2] sm:$0xff] }
  0x1c   : > { %v5314_v29 = vpack.c.bf16 %v5745_v28, %v5740_v27 }
  0x1d   : > { %5309 = vmatpush3.bf16.msra.mxu0 %v5306_v31  ;;  %v5420_v31 = vpack.i.bf16 %v5745_v28, %v5740_v27 }
  0x1e   : > { %5311 = vmatprep.subr.bf16.mxu0 %v5310_v36  ;;  %5315 = vmatprep.subr.bf16.mxu1 %v5314_v29 }
  0x1f   : > { %328 = vbcast.lane.b32.xlu0 %v326_v32, 256  ;;  %290 = vbcast.lane.b32.xlu1 %v288_v33, 256  ;;  %v5754_v32 = vld [vmem:[%s6454_s2 + $0x20] sm:$0xff]  ;;  %v5759_v33 = vld [vmem:[%s6454_s2 + $0x30] sm:$0xff] }
  0x20   : > { %5317 = vmatpush3.bf16.msra.mxu1 %v5314_v29  ;;  %v5318_v34 = vpack.c.bf16 %v5759_v33, %v5754_v32  ;;  %v257_v29 = vcvt.s32.f32 %v5669_v15 }
  0x21   : > { %5313 = vmatpush3.bf16.msra.mxu0 %v5310_v36 }
  0x22   : > { %4979 = vmatprep.subr.msk.mxu0 %vm378_vm0, %v364_v37  ;;  %5319 = vmatprep.subr.bf16.mxu1 %v5318_v34 }
  0x24   : > { %5321 = vmatpush3.bf16.msra.mxu1 %v5318_v34 }
  0x25   : > { %4980 = vmatpush3.msk.msra.mxu0 %vm378_vm0, %v364_v37  ;;  %5001 = vmatprep.subr.mxu1 %v5577_v38 }
  0x26   : > { %5041 = vmatprep.subr.mxu0 %v5577_v38 }
  0x85   : > { %v315_v40 = vpop.permute.xlu1 %314  ;;  %v308_v41 = vpop.permute.xlu0 %307 }
  0x86   : > { %v331_v43 = vadd.s32 116, %v315_v40  ;;  %v330_v44 = vadd.s32 116, %v308_v41 }
  0x88   : > { %vm335_vm4 = vcmp.eq.s32.totalorder %v261_v42, %v331_v43  ;;  %vm334_vm8 = vcmp.eq.s32.totalorder %v261_v42, %v330_v44  ;;  %v5765_v44 = vsub.s32 2, %v5646_v6 }
  0x89   : > { %v277_v45 = vpop.permute.xlu1 %276  ;;  %v270_v46 = vpop.permute.xlu0 %269 }
  0x8a   : > { %vm293_vm2 = vcmp.eq.s32.totalorder %v261_v42, %v277_v45  ;;  %vm292_vm3 = vcmp.eq.s32.totalorder %v261_v42, %v270_v46 }
  0x8b   : > { %vm299_vm5 = vmor %vm293_vm2, %vm297_vm1 }
  0x8c   : > { %vm339_vm6 = vmor %vm299_vm5, %vm335_vm4  ;;  %vm472_vm4 = vcmask 261120   ;;  %vm687_vm5 = vcmask 130048  }
  0x8d   : > { %v322_v47 = vpop.permute.xlu0 %321  ;;  %v284_v48 = vpop.permute.xlu1 %283  ;;  %vm298_vm7 = vmor %vm292_vm3, %vm297_vm1  ;;  %v4683_v50 = vsel %vm339_vm6, 1.0, %v5577_v38  ;;  %vm1001_vm6 = vcmask 64512  }
  0x8e   : > { %v332_v49 = vadd.s32 116, %v322_v47  ;;  %vm294_vm10 = vcmp.eq.s32.totalorder %v261_v42, %v284_v48  ;;  %vm338_vm11 = vmor %vm298_vm7, %vm334_vm8  ;;  %v471_v47 = vld [vmem:[%s6457_s5 + $0x20] sm:$0x1f]  ;;  %vm2368_vm7 = vcmask 523264   ;;  %vm4521_vm8 = vcmask 1041409  }
  0x8f   : > { %vm300_vm12 = vmor %vm294_vm10, %vm297_vm1  ;;  %v4682_v51 = vsel %vm338_vm11, 1.0, %v5577_v38  ;;  %vm4527_vm10 = vcmask 1043459   ;;  %vm4607_vm11 = vcmask 257024  }
  0x90   : > { %vm336_vm13 = vcmp.eq.s32.totalorder %v261_v42, %v332_v49  ;;  %4981 = vmatprep.mubr.msk.f32.mxu0 %vm365_vm9, %v4682_v51  ;;  %v5771_v49 = vsub.s32 3, %v5646_v6  ;;  %v529_v51 = vrot.slane %v471_v47, %v5765_v44 }
  0x91   : > { %vm340_vm14 = vmor %vm300_vm12, %vm336_vm13  ;;  %4982 = vmatmul.mubr.msk.f32.vlgmr.msra.gmra.mrb[0].mxu0 %vm365_vm9, %v4683_v50  ;;  %v329_v52 = vpop.permute.xlu0 %328  ;;  %v291_v53 = vpop.permute.xlu1 %290  ;;  %vm4619_vm12 = vcmask 3072  }
  0x92   : > { %v333_v54 = vadd.s32 116, %v329_v52  ;;  %vm295_vm15 = vcmp.eq.s32.totalorder %v261_v42, %v291_v53  ;;  %v4684_v55 = vsel %vm340_vm14, 1.0, %v5577_v38 }
  0x93   : > { %vm301_vm0 = vmor %vm295_vm15, %vm297_vm1  ;;  %4984 = vmatprep.mubr.msk.f32.mxu0 %vm365_vm9, %v4684_v55  ;;  %vm5578_vm1 = vmmov 0  }
  0x94   : > { %vm337_vm2 = vcmp.eq.s32.totalorder %v261_v42, %v333_v54 }
  0x95   : > { %vm341_vm3 = vmor %vm301_vm0, %vm337_vm2 }
  0x96   : > { %v4685_v56 = vsel %vm341_vm3, 1.0, %v5577_v38 }
  0x97   : > { %4985 = vmatmul.mubr.msk.f32.gmra.mrb[2].mxu0 %vm365_vm9, %v4685_v56  ;;  %v537_v56 = vrot.slane %v471_v47, %v5771_v49  ;;  %vm4524_vm9 = vcmask 1042434  }
  0x98   : > { %5043 = vmatprep.mubr.msk.f32.mxu0 %vm5578_vm1, %v5577_v38 }
 0x164   : > { %v4983_v57 = vpop.f32.mrb[0].mxu0 }
 0x165   : > { %v448_v58 = vpop.f32.mrb[1].mxu0  ;;  %v476_v59 = vsel %vm472_vm4, %v4983_v57, 0.0 }
 0x166   : > { %477 = vadd.xlane.f32.xlu1 %v476_v59  ;;  %v473_v60 = vsel %vm472_vm4, %v448_v58, 0.0 }
 0x167   : > { %474 = vadd.xlane.f32.xlu0 %v473_v60 }
 0x16a   : > { %v4986_v61 = vpop.f32.mrb[2].mxu0 }
 0x16b   : > { %v458_v62 = vpop.f32.mrb[3].mxu0  ;;  %v482_v0 = vsel %vm472_vm4, %v4986_v61, 0.0 }
 0x16c   : > { %v479_v63 = vsel %vm472_vm4, %v458_v62, 0.0 }
 0x16d   : > { %480 = vadd.xlane.f32.xlu0 %v479_v63 }
 0x171   : > { %483 = vadd.xlane.f32.xlu0 %v482_v0 }
 0x1f3   : > { %v478_v1 = vpop.xlane.xlu1 %477 }
 0x1f4   : > { %v487_v2 = vmul.f32 0.03125, %v478_v1  ;;  %v475_v3 = vpop.xlane.xlu0 %474 }
 0x1f5   : > { %v486_v4 = vmul.f32 0.03125, %v475_v3 }
 0x1f6   : > { %v491_v5 = vsub.f32 %v4983_v57, %v487_v2 }
 0x1f7   : > { %v490_v7 = vsub.f32 %v448_v58, %v486_v4 }
 0x1f8   : > { %v495_v8 = vmul.f32 %v491_v5, %v491_v5 }
 0x1f9   : > { %v494_v9 = vmul.f32 %v490_v7, %v490_v7 }
 0x1fa   : > { %v501_v11 = vsel %vm472_vm4, %v495_v8, 0.0  ;;  %v481_v13 = vpop.xlane.xlu0 %480 }
 0x1fb   : > { %502 = vadd.xlane.f32.xlu0 %v501_v11  ;;  %v498_v14 = vsel %vm472_vm4, %v494_v9, 0.0  ;;  %v488_v17 = vmul.f32 0.03125, %v481_v13 }
 0x1fc   : > { %499 = vadd.xlane.f32.xlu1 %v498_v14 }
 0x1fd   : > { %v492_v18 = vsub.f32 %v458_v62, %v488_v17 }
 0x1fe   : > { %v484_v19 = vpop.xlane.xlu0 %483 }
 0x1ff   : > { %v489_v20 = vmul.f32 0.03125, %v484_v19  ;;  %v496_v21 = vmul.f32 %v492_v18, %v492_v18 }
 0x201   : > { %v493_v22 = vsub.f32 %v4986_v61, %v489_v20  ;;  %v504_v23 = vsel %vm472_vm4, %v496_v21, 0.0 }
 0x202   : > { %505 = vadd.xlane.f32.xlu1 %v504_v23 }
 0x203   : > { %v497_v25 = vmul.f32 %v493_v22, %v493_v22 }
 0x205   : > { %v507_v26 = vsel %vm472_vm4, %v497_v25, 0.0 }
 0x206   : > { %508 = vadd.xlane.f32.xlu0 %v507_v26  ;;  %v256_v26 = vcvt.s32.f32 %v5671_v16 }
 0x208   : > { %v542_v34 = vsub.f32 1.0, %v256_v26 }
 0x288   : > { %v503_v35 = vpop.xlane.xlu0 %502 }
 0x289   : > { %v511_v36 = vmul.f32 0.03125, %v503_v35  ;;  %v500_v37 = vpop.xlane.xlu1 %499  ;;  %v543_v35 = vsub.f32 1.0, %v257_v29 }
 0x28a   : > { %v510_v39 = vmul.f32 0.03125, %v500_v37  ;;  %v258_v37 = vcvt.s32.f32 %v5687_v24 }
 0x28b   : > { %v515_v40 = vadd.f32 1e-12, %v511_v36  ;;  %v546_v36 = vmul.f32 -1e+09, %v542_v34 }
 0x28c   : > { %v514_v41 = vadd.f32 1e-12, %v510_v39  ;;  %v547_v39 = vmul.f32 -1e+09, %v543_v35 }
 0x28d   : > { %5440 = vrsqrt.f32 %v515_v40  ;;  %v5849_v40 = vrot.slane %v546_v36, %v5765_v44 }
 0x28e   : > { %5442 = vrsqrt.f32 %v514_v41  ;;  %v544_v41 = vsub.f32 1.0, %v258_v37  ;;  %v5853_v16 = vrot.slane %v547_v39, %v5765_v44 }
 0x28f   : > { %v506_v42 = vpop.xlane.xlu1 %505 }
 0x290   : > { %v512_v43 = vmul.f32 0.03125, %v506_v42  ;;  %v259_v42 = vcvt.s32.f32 %v5699_v30  ;;  %v548_v47 = vmul.f32 -1e+09, %v544_v41 }
 0x292   : > { %v516_v45 = vadd.f32 1e-12, %v512_v43  ;;  %v5859_v30 = vrot.slane %v548_v47, %v5765_v44 }
 0x293   : > { %v509_v46 = vpop.xlane.xlu0 %508 }
 0x294   : > { %5444 = vrsqrt.f32 %v516_v45  ;;  %v513_v48 = vmul.f32 0.03125, %v509_v46 }
 0x296   : > { %v517_v50 = vadd.f32 1e-12, %v513_v48  ;;  %v545_v48 = vsub.f32 1.0, %v259_v42 }
 0x297   : > { %v5441_v52 = vpop.eup %5440 }
 0x298   : > { %v5443_v53 = vpop.eup %5442  ;;  %5446 = vrsqrt.f32 %v517_v50  ;;  %v523_v54 = vmul.f32 %v5441_v52, %v491_v5  ;;  %v5798_v5 = vld [vmem:[%s6456_s4] sm:$0xff] }
 0x299   : > { %v522_v55 = vmul.f32 %v5443_v53, %v490_v7  ;;  %v586_v7 = vrot.slane %v5798_v5, %v5661_v12 }
 0x29a   : > { %v531_v57 = vmul.f32 %v529_v51, %v523_v54  ;;  %v549_v54 = vmul.f32 -1e+09, %v545_v48 }
 0x29b   : > { %v530_v58 = vmul.f32 %v529_v51, %v522_v55 }
 0x29c   : > { %v5777_v61 = vadd.f32 %v537_v56, %v531_v57 }
 0x29d   : > { %v5775_v59 = vadd.f32 %v537_v56, %v530_v58 }
 0x29e   : > { %v5445_v60 = vpop.eup %5444 }
 0x29f   : > { %4995 = vmatprep.mubr.msk.f32.mxu1 %vm472_vm4, %v5775_v59  ;;  %v524_v62 = vmul.f32 %v5445_v60, %v492_v18  ;;  %v5863_v60 = vrot.slane %v549_v54, %v5765_v44 }
 0x2a0   : > { %4996 = vmatmul.mubr.msk.f32.vlgmr.msra.gmra.mrb[0].mxu1 %vm472_vm4, %v5777_v61 }
 0x2a1   : > { %v532_v63 = vmul.f32 %v529_v51, %v524_v62 }
 0x2a2   : > { %v5447_v0 = vpop.eup %5446 }
 0x2a3   : > { %v5783_v1 = vadd.f32 %v537_v56, %v532_v63  ;;  %v525_v2 = vmul.f32 %v5447_v0, %v493_v22 }
 0x2a5   : > { %4998 = vmatprep.mubr.msk.f32.mxu1 %vm472_vm4, %v5783_v1  ;;  %v533_v3 = vmul.f32 %v529_v51, %v525_v2 }
 0x2a7   : > { %v5787_v4 = vadd.f32 %v537_v56, %v533_v3 }
 0x2a9   : > { %4999 = vmatmul.mubr.msk.f32.gmra.mrb[2].mxu1 %vm472_vm4, %v5787_v4 }
 0x2aa   : > { %5003 = vmatprep.mubr.msk.f32.mxu1 %vm5578_vm1, %v5577_v38 }
 0x373   : > { %v4997_v8 = vpop.f32.mrb[0].mxu1 }
 0x374   : > { %v5802_v9 = vadd.f32 %v4997_v8, %v586_v7  ;;  %v665_v11 = vpop.f32.mrb[1].mxu1 }
 0x375   : > { %v5804_v13 = vadd.f32 %v665_v11, %v586_v7 }
 0x376   : > { %763 = vrot.lane.b32.xlu0 %v5802_v9, %s5579_s26 }
 0x377   : > { %685 = vrot.lane.b32.xlu1 %v5804_v13, %s5579_s26 }
 0x37c   : > { %v5000_v14 = vpop.f32.mrb[2].mxu1 }
 0x37d   : > { %v675_v17 = vpop.f32.mrb[3].mxu1  ;;  %v5814_v19 = vadd.f32 %v5000_v14, %v586_v7 }
 0x37e   : > { %v5810_v18 = vadd.f32 %v675_v17, %v586_v7 }
 0x380   : > { %840 = vrot.lane.b32.xlu1 %v5810_v18, %s5579_s26 }
 0x384   : > { %917 = vrot.lane.b32.xlu1 %v5814_v19, %s5579_s26 }
 0x388   : > { %1046 = vrot.lane.b32.xlu1 %v5804_v13, %s5580_s27 }
 0x3e8   : > { %v764_v21 = vpop.permute.xlu0 %763 }
 0x3e9   : > { %v686_v20 = vpop.permute.xlu1 %685 }
 0x3ea   : > { %5002 = vmatpush3.xpose.msk.msra.mxu1 %vm687_vm5, %v686_v20 }
 0x3eb   : > { %5006 = vmatprep.subr.mxu1 %v5577_v38 }
 0x3ed   : > { %5004 = vmatmul.mubr.msk.f32.vlgmr.msra.gmra.mrb[4].mxu1 %vm687_vm5, %v5804_v13 }
 0x3ee   : > { %5007 = vmatpush3.xpose.msk.msra.mxu1 %vm687_vm5, %v764_v21  ;;  %5008 = vmatprep.mubr.msk.f32.mxu1 %vm5578_vm1, %v5577_v38 }
 0x3ef   : > { %5011 = vmatprep.subr.mxu1 %v5577_v38 }
 0x3f1   : > { %5009 = vmatmul.mubr.msk.f32.vlgmr.msra.gmra.mrb[6].mxu1 %vm687_vm5, %v5802_v9 }
 0x3f2   : > { %v841_v22 = vpop.permute.xlu1 %840  ;;  %5013 = vmatprep.mubr.msk.f32.mxu1 %vm5578_vm1, %v5577_v38 }
 0x3f3   : > { %5012 = vmatpush3.xpose.msk.msra.mxu1 %vm687_vm5, %v841_v22 }
 0x3f4   : > { %5016 = vmatprep.subr.mxu1 %v5577_v38 }
 0x3f6   : > { %v918_v23 = vpop.permute.xlu1 %917  ;;  %5014 = vmatmul.mubr.msk.f32.vlgmr.msra.gmra.mrb[8].mxu1 %vm687_vm5, %v5810_v18 }
 0x3f7   : > { %5017 = vmatpush3.xpose.msk.msra.mxu1 %vm687_vm5, %v918_v23  ;;  %5018 = vmatprep.mubr.msk.f32.mxu1 %vm5578_vm1, %v5577_v38 }
 0x3f8   : > { %5021 = vmatprep.subr.mxu1 %v5577_v38 }
 0x3fa   : > { %v1047_v25 = vpop.permute.xlu1 %1046  ;;  %5019 = vmatmul.mubr.msk.f32.vlgmr.msra.gmra.mrb[10].mxu1 %vm687_vm5, %v5814_v19 }
 0x3fb   : > { %5022 = vmatpush3.msra.mxu1 %v1047_v25  ;;  %5023 = vmatprep.mubr.msk.f32.mxu1 %vm5578_vm1, %v5577_v38 }
 0x3fc   : > { %5026 = vmatprep.subr.mxu1 %v5577_v38 }
 0x4c0   : > { %v758_v43 = vpop.f32.mrb[4].mxu1 }
 0x4c1   : > { %v993_v45 = vmul.f32 0.25, %v758_v43  ;;  %v5005_v46 = vpop.f32.mrb[5].mxu1 }
 0x4c3   : > { %v997_v15 = vadd.f32 %v993_v45, %v5849_v40 }
 0x4c4   : > { %v835_v50 = vpop.f32.mrb[6].mxu1 }
 0x4c5   : > { %v994_v24 = vmul.f32 0.25, %v835_v50  ;;  %v5010_v51 = vpop.f32.mrb[7].mxu1  ;;  %v1002_v52 = vsel %vm1001_vm6, %v997_v15, -inf }
 0x4c6   : > { %1003 = vmax.xlane.f32.xlu0 %v1002_v52 }
 0x4c7   : > { %v998_v53 = vadd.f32 %v994_v24, %v5853_v16 }
 0x4c9   : > { %v1005_v55 = vsel %vm1001_vm6, %v998_v53, -inf  ;;  %v912_v56 = vpop.f32.mrb[8].mxu1 }
 0x4ca   : > { %1006 = vmax.xlane.f32.xlu1 %v1005_v55  ;;  %v995_v57 = vmul.f32 0.25, %v912_v56  ;;  %v5015_v58 = vpop.f32.mrb[9].mxu1 }
 0x4cc   : > { %v999_v62 = vadd.f32 %v995_v57, %v5859_v30 }
 0x4cd   : > { %v989_v63 = vpop.f32.mrb[10].mxu1 }
 0x4ce   : > { %v996_v0 = vmul.f32 0.25, %v989_v63  ;;  %v5020_v2 = vpop.f32.mrb[11].mxu1  ;;  %v1008_v3 = vsel %vm1001_vm6, %v999_v62, -inf }
 0x4cf   : > { %1009 = vmax.xlane.f32.xlu0 %v1008_v3 }
 0x4d0   : > { %v1000_v7 = vadd.f32 %v996_v0, %v5863_v60 }
 0x4d2   : > { %v1011_v8 = vsel %vm1001_vm6, %v1000_v7, -inf }
 0x4d3   : > { %1012 = vmax.xlane.f32.xlu0 %v1011_v8 }
 0x4db   : > { %1198 = vrot.lane.b32.xlu1 %v5810_v18, %s5580_s27 }
 0x4e9   : > { %1122 = vrot.lane.b32.xlu0 %v5802_v9, %s5580_s27 }
 0x553   : > { %v1004_v11 = vpop.xlane.xlu0 %1003 }
 0x554   : > { %v1014_v14 = vsub.f32 %v997_v15, %v1004_v11 }
 0x556   : > { %v1018_v17 = vmul.f32 1.442695, %v1014_v14 }
 0x557   : > { %v1007_v20 = vpop.xlane.xlu1 %1006 }
 0x558   : > { %5448 = vpow2.f32 %v1018_v17  ;;  %v1015_v21 = vsub.f32 %v998_v53, %v1007_v20 }
 0x55a   : > { %v1020_v22 = vmul.f32 1.442695, %v1015_v21 }
 0x55b   : > { %v1199_v15 = vpop.permute.xlu1 %1198 }
 0x55c   : > { %5450 = vpow2.f32 %v1020_v22  ;;  %v1010_v34 = vpop.xlane.xlu0 %1009 }
 0x55d   : > { %v1016_v35 = vsub.f32 %v999_v62, %v1010_v34 }
 0x55f   : > { %v1022_v37 = vmul.f32 1.442695, %v1016_v35 }
 0x560   : > { %v1013_v36 = vpop.xlane.xlu0 %1012 }
 0x561   : > { %v1017_v39 = vsub.f32 %v1000_v7, %v1013_v36  ;;  %5452 = vpow2.f32 %v1022_v37 }
 0x562   : > { %v5449_v23 = vpop.eup %5448 }
 0x563   : > { %v1026_v25 = vsel %vm1001_vm6, %v5449_v23, 0.0  ;;  %v1024_v41 = vmul.f32 1.442695, %v1017_v39 }
 0x564   : > { %1027 = vadd.xlane.f32.xlu1 %v1026_v25  ;;  %v1123_v47 = vpop.permute.xlu0 %1122 }
 0x565   : > { %5454 = vpow2.f32 %v1024_v41 }
 0x566   : > { %v5451_v26 = vpop.eup %5450 }
 0x567   : > { %v1029_v29 = vsel %vm1001_vm6, %v5451_v26, 0.0 }
 0x568   : > { %1030 = vadd.xlane.f32.xlu0 %v1029_v29 }
 0x56b   : > { %v5453_v42 = vpop.eup %5452 }
 0x56c   : > { %v1032_v43 = vsel %vm1001_vm6, %v5453_v42, 0.0 }
 0x56f   : > { %v5455_v45 = vpop.eup %5454 }
 0x570   : > { %v1035_v46 = vsel %vm1001_vm6, %v5455_v45, 0.0 }
 0x575   : > { %1274 = vrot.lane.b32.xlu1 %v5814_v19, %s5580_s27 }
 0x57e   : > { %1352 = vrot.lane.b32.xlu0 %v5804_v13, %s5581_s28 }
 0x599   : > { %1033 = vadd.xlane.f32.xlu1 %v1032_v43 }
 0x59d   : > { %1036 = vadd.xlane.f32.xlu0 %v1035_v46 }
 0x5aa   : > { %1430 = vrot.lane.b32.xlu1 %v5802_v9, %s5581_s28 }
 0x5ae   : > { %1428 = vrot.lane.b32.xlu1 %v5802_v9, %s5582_s29 }
 0x5b2   : > { %1586 = vrot.lane.b32.xlu1 %v5814_v19, %s5581_s28 }
 0x5b3   : > { %1350 = vrot.lane.b32.xlu0 %v5804_v13, %s5582_s29 }
 0x5b6   : > { %1584 = vrot.lane.b32.xlu1 %v5814_v19, %s5582_s29 }
 0x5b7   : > { %1508 = vrot.lane.b32.xlu0 %v5810_v18, %s5581_s28 }
 0x5bb   : > { %1506 = vrot.lane.b32.xlu0 %v5810_v18, %s5582_s29 }
 0x5f1   : > { %v1028_v48 = vpop.xlane.xlu1 %1027 }
 0x5f2   : > { %5456 = vrcp.f32 %v1028_v48 }
 0x5f5   : > { %v1031_v50 = vpop.xlane.xlu0 %1030  ;;  %v1275_v55 = vpop.permute.xlu1 %1274 }
 0x5f6   : > { %5458 = vrcp.f32 %v1031_v50 }
 0x5f9   : > { %v1353_v24 = vpop.permute.xlu0 %1352 }
 0x5fa   : > { %5042 = vmatpush3.xpose.msk.msra.mxu0 %vm687_vm5, %v1353_v24 }
 0x5fb   : > { %5051 = vmatprep.subr.mxu0 %v5577_v38 }
 0x5fc   : > { %v5457_v51 = vpop.eup %5456 }
 0x5fd   : > { %v1042_v52 = vmul.f32 %v5457_v51, %v5449_v23 }
 0x5ff   : > { %5024 = vmatmul.mubr.msk.f32.vlgmr.msra.gmra.mrb[12].mxu1 %vm1001_vm6, %v1042_v52 }
 0x600   : > { %v5459_v53 = vpop.eup %5458  ;;  %5027 = vmatpush3.msra.mxu1 %v1123_v47  ;;  %5028 = vmatprep.mubr.msk.f32.mxu1 %vm5578_vm1, %v5577_v38 }
 0x601   : > { %5031 = vmatprep.subr.mxu1 %v5577_v38  ;;  %v1043_v54 = vmul.f32 %v5459_v53, %v5451_v26 }
 0x603   : > { %5029 = vmatmul.mubr.msk.f32.vlgmr.msra.gmra.mrb[14].mxu1 %vm1001_vm6, %v1043_v54 }
 0x604   : > { %5032 = vmatpush3.msra.mxu1 %v1199_v15  ;;  %5033 = vmatprep.mubr.msk.f32.mxu1 %vm5578_vm1, %v5577_v38 }
 0x605   : > { %5036 = vmatprep.subr.mxu1 %v5577_v38 }
 0x626   : > { %v1034_v56 = vpop.xlane.xlu1 %1033 }
 0x627   : > { %5460 = vrcp.f32 %v1034_v56 }
 0x62a   : > { %v1037_v57 = vpop.xlane.xlu0 %1036  ;;  %v1431_v62 = vpop.permute.xlu1 %1430 }
 0x62b   : > { %5462 = vrcp.f32 %v1037_v57 }
 0x62e   : > { %v1351_v58 = vpop.permute.xlu0 %1350  ;;  %v1429_v7 = vpop.permute.xlu1 %1428 }
 0x62f   : > { %5044 = vmatmul.mubr.msk.f32.vlgmr.msra.gmra.mrb[4].mxu0 %vm687_vm5, %v1351_v58 }
 0x630   : > { %5053 = vmatprep.mubr.msk.f32.mxu0 %vm5578_vm1, %v5577_v38 }
 0x631   : > { %v5461_v63 = vpop.eup %5460 }
 0x632   : > { %v1509_v0 = vpop.permute.xlu0 %1508  ;;  %v1044_v2 = vmul.f32 %v5461_v63, %v5453_v42  ;;  %v1587_v14 = vpop.permute.xlu1 %1586 }
 0x633   : > { %5052 = vmatpush3.xpose.msk.msra.mxu0 %vm687_vm5, %v1509_v0 }
 0x634   : > { %5034 = vmatmul.mubr.msk.f32.vlgmr.msra.gmra.mrb[16].mxu1 %vm1001_vm6, %v1044_v2  ;;  %5061 = vmatprep.subr.mxu0 %v5577_v38 }
 0x635   : > { %v5463_v3 = vpop.eup %5462  ;;  %5037 = vmatpush3.msra.mxu1 %v1275_v55  ;;  %5038 = vmatprep.mubr.msk.f32.mxu1 %vm5578_vm1, %v5577_v38 }
 0x636   : > { %v1507_v8 = vpop.permute.xlu0 %1506  ;;  %v1045_v11 = vmul.f32 %v5463_v3, %v5455_v45  ;;  %5046 = vmatprep.subr.mxu1 %v5577_v38  ;;  %v1585_v17 = vpop.permute.xlu1 %1584 }
 0x637   : > { %5054 = vmatmul.mubr.msk.f32.vlgmr.msra.gmra.mrb[6].mxu0 %vm687_vm5, %v1507_v8 }
 0x638   : > { %5039 = vmatmul.mubr.msk.f32.vlgmr.msra.gmra.mrb[18].mxu1 %vm1001_vm6, %v1045_v11  ;;  %5063 = vmatprep.mubr.msk.f32.mxu0 %vm5578_vm1, %v5577_v38 }
 0x639   : > { %5048 = vmatprep.mubr.msk.f32.mxu1 %vm5578_vm1, %v5577_v38 }
 0x63c   : > { %5047 = vmatpush3.xpose.msk.msra.mxu1 %vm687_vm5, %v1431_v62 }
 0x63d   : > { %5056 = vmatprep.subr.mxu1 %v5577_v38 }
 0x63f   : > { %5049 = vmatmul.mubr.msk.f32.vlgmr.msra.gmra.mrb[20].mxu1 %vm687_vm5, %v1429_v7 }
 0x640   : > { %5057 = vmatpush3.xpose.msk.msra.mxu1 %vm687_vm5, %v1587_v14  ;;  %5058 = vmatprep.mubr.msk.f32.mxu1 %vm5578_vm1, %v5577_v38 }
 0x641   : > { %5066 = vmatprep.subr.mxu1 %v5577_v38 }
 0x643   : > { %5059 = vmatmul.mubr.msk.f32.vlgmr.msra.gmra.mrb[22].mxu1 %vm687_vm5, %v1585_v17 }
 0x644   : > { %5068 = vmatprep.mubr.msk.f32.mxu1 %vm5578_vm1, %v5577_v38 }
 0x6d2   : > { %v5930_v20 = vpop.f32.mrb[12].mxu1 }
 0x6d3   : > { %v5025_v21 = vpop.f32.mrb[13].mxu1 }
 0x6d6   : > { %v5932_v22 = vpop.f32.mrb[14].mxu1 }
 0x6d7   : > { %v5030_v23 = vpop.f32.mrb[15].mxu1 }
 0x702   : > { %v1424_v25 = vpop.f32.mrb[4].mxu0 }
 0x703   : > { %v1662_v26 = vmul.f32 0.25, %v1424_v25  ;;  %v5045_v29 = vpop.f32.mrb[5].mxu0 }
 0x705   : > { %v1666_v34 = vadd.f32 %v1662_v26, %v5849_v40 }
 0x707   : > { %v5935_v35 = vpop.f32.mrb[16].mxu1  ;;  %v1670_v36 = vsel %vm1001_vm6, %v1666_v34, -inf }
 0x708   : > { %v5035_v37 = vpop.f32.mrb[17].mxu1  ;;  %1671 = vmax.xlane.f32.xlu0 %v1670_v36 }
 0x70a   : > { %v1580_v39 = vpop.f32.mrb[6].mxu0 }
 0x70b   : > { %v1664_v41 = vmul.f32 0.25, %v1580_v39  ;;  %v5938_v42 = vpop.f32.mrb[18].mxu1  ;;  %v5055_v43 = vpop.f32.mrb[7].mxu0 }
 0x70c   : > { %v5040_v45 = vpop.f32.mrb[19].mxu1 }
 0x70d   : > { %v1668_v46 = vadd.f32 %v1664_v41, %v5859_v30 }
 0x70f   : > { %v1676_v15 = vsel %vm1001_vm6, %v1668_v46, -inf }
 0x710   : > { %1677 = vmax.xlane.f32.xlu0 %v1676_v15 }
 0x712   : > { %v1502_v47 = vpop.f32.mrb[20].mxu1 }
 0x713   : > { %v1663_v48 = vmul.f32 0.25, %v1502_v47  ;;  %v5050_v50 = vpop.f32.mrb[21].mxu1 }
 0x715   : > { %v1667_v24 = vadd.f32 %v1663_v48, %v5853_v16 }
 0x716   : > { %v1658_v51 = vpop.f32.mrb[22].mxu1 }
 0x717   : > { %v1665_v52 = vmul.f32 0.25, %v1658_v51  ;;  %v5060_v53 = vpop.f32.mrb[23].mxu1  ;;  %v1673_v54 = vsel %vm1001_vm6, %v1667_v24, -inf }
 0x718   : > { %1674 = vmax.xlane.f32.xlu1 %v1673_v54 }
 0x719   : > { %v1669_v55 = vadd.f32 %v1665_v52, %v5863_v60 }
 0x71b   : > { %v1679_v56 = vsel %vm1001_vm6, %v1669_v55, -inf }
 0x71c   : > { %1680 = vmax.xlane.f32.xlu0 %v1679_v56 }
 0x795   : > { %v1672_v57 = vpop.xlane.xlu0 %1671 }
 0x796   : > { %v1682_v58 = vsub.f32 %v1666_v34, %v1672_v57 }
 0x798   : > { %v1686_v62 = vmul.f32 1.442695, %v1682_v58 }
 0x79a   : > { %5464 = vpow2.f32 %v1686_v62 }
 0x79d   : > { %v1678_v63 = vpop.xlane.xlu0 %1677 }
 0x79e   : > { %v1684_v0 = vsub.f32 %v1668_v46, %v1678_v63 }
 0x7a0   : > { %v1690_v2 = vmul.f32 1.442695, %v1684_v0 }
 0x7a2   : > { %5466 = vpow2.f32 %v1690_v2 }
 0x7a4   : > { %v5465_v3 = vpop.eup %5464 }
 0x7a5   : > { %v1675_v7 = vpop.xlane.xlu1 %1674  ;;  %v1694_v8 = vsel %vm1001_vm6, %v5465_v3, 0.0 }
 0x7a6   : > { %v1683_v11 = vsub.f32 %v1667_v24, %v1675_v7  ;;  %1695 = vadd.xlane.f32.xlu1 %v1694_v8  ;;  %v5425_v24 = vpack.i.bf16 %v5759_v33, %v5754_v32 }
 0x7a8   : > { %v1688_v14 = vmul.f32 1.442695, %v1683_v11 }
 0x7a9   : > { %v1681_v17 = vpop.xlane.xlu0 %1680 }
 0x7aa   : > { %5468 = vpow2.f32 %v1688_v14  ;;  %v1685_v21 = vsub.f32 %v1669_v55, %v1681_v17 }
 0x7ac   : > { %v5467_v23 = vpop.eup %5466  ;;  %v1692_v25 = vmul.f32 1.442695, %v1685_v21 }
 0x7ad   : > { %v1700_v26 = vsel %vm1001_vm6, %v5467_v23, 0.0 }
 0x7ae   : > { %5470 = vpow2.f32 %v1692_v25  ;;  %1701 = vadd.xlane.f32.xlu1 %v1700_v26 }
 0x7b4   : > { %v5469_v29 = vpop.eup %5468 }
 0x7b5   : > { %v1697_v34 = vsel %vm1001_vm6, %v5469_v29, 0.0 }
 0x7b6   : > { %1698 = vadd.xlane.f32.xlu0 %v1697_v34 }
 0x7b8   : > { %v5471_v36 = vpop.eup %5470 }
 0x7b9   : > { %v1703_v37 = vsel %vm1001_vm6, %v5471_v36, 0.0 }
 0x7ba   : > { %1704 = vadd.xlane.f32.xlu0 %v1703_v37 }
 0x7bf   : > { %1714 = vrot.lane.b32.xlu1 %v5804_v13, %s5583_s30 }
 0x7c3   : > { %1866 = vrot.lane.b32.xlu1 %v5810_v18, %s5583_s30 }
 0x7c7   : > { %1942 = vrot.lane.b32.xlu1 %v5814_v19, %s5583_s30 }
 0x7cb   : > { %5426 = vrot.lane.b32.xlu1 %v5425_v24, %s5584_s7 }
 0x7d0   : > { %1790 = vrot.lane.b32.xlu0 %v5802_v9, %s5583_s30 }
 0x7d4   : > { %5421 = vrot.lane.b32.xlu0 %v5420_v31, %s5584_s7 }
 0x833   : > { %v1696_v39 = vpop.xlane.xlu1 %1695 }
 0x834   : > { %5472 = vrcp.f32 %v1696_v39 }
 0x83b   : > { %v1702_v41 = vpop.xlane.xlu1 %1701 }
 0x83c   : > { %5474 = vrcp.f32 %v1702_v41 }
 0x83e   : > { %v5473_v13 = vpop.eup %5472 }
 0x83f   : > { %v1710_v43 = vmul.f32 %v5473_v13, %v5465_v3  ;;  %v1715_v45 = vpop.permute.xlu1 %1714 }
 0x840   : > { %5062 = vmatpush3.msra.mxu0 %v1715_v45 }
 0x841   : > { %5064 = vmatmul.mubr.msk.f32.vlgmr.msra.gmra.mrb[8].mxu0 %vm1001_vm6, %v1710_v43  ;;  %5071 = vmatprep.subr.mxu0 %v5577_v38 }
 0x842   : > { %5073 = vmatprep.mubr.msk.f32.mxu0 %vm5578_vm1, %v5577_v38 }
 0x843   : > { %v1699_v9 = vpop.xlane.xlu0 %1698  ;;  %v1867_v18 = vpop.permute.xlu1 %1866 }
 0x844   : > { %5476 = vrcp.f32 %v1699_v9  ;;  %5072 = vmatpush3.msra.mxu0 %v1867_v18 }
 0x846   : > { %v5475_v27 = vpop.eup %5474 }
 0x847   : > { %v1712_v28 = vmul.f32 %v5475_v27, %v5467_v23  ;;  %v1705_v31 = vpop.xlane.xlu0 %1704  ;;  %v1943_v47 = vpop.permute.xlu1 %1942 }
 0x848   : > { %5478 = vrcp.f32 %v1705_v31 }
 0x849   : > { %5074 = vmatmul.mubr.msk.f32.vlgmr.msra.gmra.mrb[10].mxu0 %vm1001_vm6, %v1712_v28 }
 0x84b   : > { %v1791_v19 = vpop.permute.xlu0 %1790  ;;  %v5427_v55 = vpop.permute.xlu1 %5426 }
 0x84c   : > { %5067 = vmatpush3.msra.mxu1 %v1791_v19  ;;  %v5429_v56 = vunpack.i.h.bf16 %v5427_v55  ;;  %v5428_v57 = vunpack.i.l.bf16 %v5427_v55 }
 0x84d   : > { %5076 = vmatprep.subr.mxu1 %v5577_v38 }
 0x84e   : > { %v5477_v46 = vpop.eup %5476  ;;  %v5326_v58 = vpack.c.bf16 %v5429_v56, %v5428_v57 }
 0x84f   : > { %v1711_v15 = vmul.f32 %v5477_v46, %v5469_v29  ;;  %v5422_v51 = vpop.permute.xlu0 %5421 }
 0x850   : > { %v5424_v52 = vunpack.i.h.bf16 %v5422_v51  ;;  %v5423_v53 = vunpack.i.l.bf16 %v5422_v51 }
 0x851   : > { %5069 = vmatmul.mubr.msk.f32.vlgmr.msra.gmra.mrb[24].mxu1 %vm1001_vm6, %v1711_v15 }
 0x852   : > { %v5479_v48 = vpop.eup %5478  ;;  %5077 = vmatpush3.msra.mxu1 %v1943_v47  ;;  %5078 = vmatprep.mubr.msk.f32.mxu1 %vm5578_vm1, %v5577_v38  ;;  %v5322_v54 = vpack.c.bf16 %v5424_v52, %v5423_v53 }
 0x853   : > { %v1713_v50 = vmul.f32 %v5479_v48, %v5471_v36 }
 0x854   : > { %5323 = vmatprep.subr.bf16.mxu0 %v5322_v54 }
 0x855   : > { %5079 = vmatmul.mubr.msk.f32.vlgmr.msra.gmra.mrb[26].mxu1 %vm1001_vm6, %v1713_v50  ;;  %5325 = vmatpush3.bf16.msra.mxu0 %v5322_v54 }
 0x856   : > { %5327 = vmatprep.subr.bf16.mxu0 %v5326_v58 }
 0x859   : > { %5329 = vmatpush3.bf16.msra.mxu0 %v5326_v58 }
 0x914   : > { %v1786_v62 = vpop.f32.mrb[8].mxu0 }
 0x915   : > { %v5065_v63 = vpop.f32.mrb[9].mxu0  ;;  %2022 = vrot.lane.b32.xlu0 %v1786_v62, %s5585_s8  ;;  %v567_v62 = vld [vmem:[%s6454_s2 + $0x8] sm:$0xff] }
 0x916   : > { %v569_v63 = vld [vmem:[%s6454_s2 + $0x18] sm:$0xff] }
 0x91c   : > { %v1938_v32 = vpop.f32.mrb[10].mxu0 }
 0x91d   : > { %v5075_v33 = vpop.f32.mrb[11].mxu0  ;;  %2026 = vrot.lane.b32.xlu0 %v1938_v32, %s5585_s8  ;;  %v5330_v32 = vpack.c.bf16 %v569_v63, %v567_v62 }
 0x91e   : > { %v571_v33 = vld [vmem:[%s6454_s2 + $0x28] sm:$0xff] }
 0x91f   : > { %5331 = vmatprep.subr.bf16.mxu1 %v5330_v32 }
 0x920   : > { %5333 = vmatpush3.bf16.msra.mxu1 %v5330_v32 }
 0x924   : > { %v1862_v0 = vpop.f32.mrb[24].mxu1 }
 0x925   : > { %2024 = vrot.lane.b32.xlu1 %v1862_v0, %s5585_s8  ;;  %v5070_v2 = vpop.f32.mrb[25].mxu1  ;;  %v573_v0 = vld [vmem:[%s6454_s2 + $0x38] sm:$0xff] }
 0x926   : > { %v5334_v2 = vpack.c.bf16 %v573_v0, %v571_v33 }
 0x928   : > { %v2014_v3 = vpop.f32.mrb[26].mxu1  ;;  %5335 = vmatprep.subr.bf16.mxu1 %v5334_v2 }
 0x929   : > { %2028 = vrot.lane.b32.xlu1 %v2014_v3, %s5585_s8  ;;  %v5080_v7 = vpop.f32.mrb[27].mxu1  ;;  %5337 = vmatpush3.bf16.msra.mxu1 %v5334_v2 }
 0x987   : > { %v2023_v8 = vpop.permute.xlu0 %2022 }
 0x988   : > { %v2034_v11 = vsel %vm687_vm5, %v5930_v20, %v2023_v8  ;;  %v2041_v20 = vrot.slane %v5798_v5, %v5655_v10 }
 0x989   : > { %5089 = vmatprep.mubr.msk.f32.mxu0 %vm472_vm4, %v2034_v11 }
 0x98f   : > { %v2027_v14 = vpop.permute.xlu0 %2026 }
 0x990   : > { %v2036_v23 = vsel %vm687_vm5, %v5935_v35, %v2027_v14 }
 0x997   : > { %v2025_v17 = vpop.permute.xlu1 %2024 }
 0x998   : > { %v2035_v21 = vsel %vm687_vm5, %v5932_v22, %v2025_v17 }
 0x999   : > { %5090 = vmatmul.mubr.msk.f32.vlgmr.msra.gmra.mrb[12].mxu0 %vm472_vm4, %v2035_v21 }
 0x99a   : > { %5092 = vmatprep.mubr.msk.f32.mxu0 %vm472_vm4, %v2036_v23 }
 0x99b   : > { %v2029_v25 = vpop.permute.xlu1 %2028 }
 0x99c   : > { %v2037_v26 = vsel %vm687_vm5, %v5938_v42, %v2029_v25 }
 0x99d   : > { %5093 = vmatmul.mubr.msk.f32.gmra.mrb[14].mxu0 %vm472_vm4, %v2037_v26 }
 0xa6c   : > { %v5091_v29 = vpop.f32.mrb[12].mxu0 }
 0xa6d   : > { %v2142_v34 = vadd.f32 %v5091_v29, %v2041_v20  ;;  %v2136_v36 = vpop.f32.mrb[13].mxu0 }
 0xa6e   : > { %v2137_v22 = vadd.f32 %v2136_v36, %v2041_v20 }
 0xa6f   : > { %v2156_v37 = vadd.f32 %v2142_v34, %v5777_v61  ;;  %v2214_v34 = vrot.slane %v5798_v5, %v5765_v44 }
 0xa70   : > { %v5094_v35 = vpop.f32.mrb[14].mxu0  ;;  %v2155_v39 = vadd.f32 %v2137_v22, %v5775_v59 }
 0xa71   : > { %v2146_v41 = vpop.f32.mrb[15].mxu0  ;;  %v2162_v13 = vsel %vm472_vm4, %v2156_v37, 0.0  ;;  %v2152_v43 = vadd.f32 %v5094_v35, %v2041_v20 }
 0xa72   : > { %v2147_v45 = vadd.f32 %v2146_v41, %v2041_v20  ;;  %2163 = vadd.xlane.f32.xlu1 %v2162_v13  ;;  %v2159_v42 = vsel %vm472_vm4, %v2155_v39, 0.0 }
 0xa73   : > { %2160 = vadd.xlane.f32.xlu0 %v2159_v42  ;;  %v2158_v27 = vadd.f32 %v2152_v43, %v5787_v4 }
 0xa74   : > { %v2157_v9 = vadd.f32 %v2147_v45, %v5783_v1 }
 0xa75   : > { %v2168_v61 = vsel %vm472_vm4, %v2158_v27, 0.0 }
 0xa76   : > { %v2165_v18 = vsel %vm472_vm4, %v2157_v9, 0.0 }
 0xa77   : > { %2166 = vadd.xlane.f32.xlu0 %v2165_v18 }
 0xa7b   : > { %2169 = vadd.xlane.f32.xlu0 %v2168_v61 }
 0xaff   : > { %v2164_v59 = vpop.xlane.xlu1 %2163 }
 0xb00   : > { %v2172_v28 = vmul.f32 0.03125, %v2164_v59  ;;  %v2161_v31 = vpop.xlane.xlu0 %2160 }
 0xb01   : > { %v2171_v19 = vmul.f32 0.03125, %v2161_v31 }
 0xb02   : > { %v2176_v46 = vsub.f32 %v2156_v37, %v2172_v28 }
 0xb03   : > { %v2175_v15 = vsub.f32 %v2155_v39, %v2171_v19  ;;  %v2222_v39 = vrot.slane %v5798_v5, %v5771_v49  ;;  %v574_v19 = vld [vmem:[%s6455_s3] sm:$0xff] }
 0xb04   : > { %v2167_v47 = vpop.xlane.xlu0 %2166  ;;  %v2180_v48 = vmul.f32 %v2176_v46, %v2176_v46 }
 0xb05   : > { %v2173_v50 = vmul.f32 0.03125, %v2167_v47  ;;  %v2179_v24 = vmul.f32 %v2175_v15, %v2175_v15  ;;  %v576_v47 = vld [vmem:[%s6455_s3 + $0x10] sm:$0xff] }
 0xb06   : > { %v2186_v1 = vsel %vm472_vm4, %v2180_v48, 0.0  ;;  %v577_v48 = vld [vmem:[%s6455_s3 + $0x18] sm:$0xff] }
 0xb07   : > { %v2177_v51 = vsub.f32 %v2157_v9, %v2173_v50  ;;  %2187 = vadd.xlane.f32.xlu0 %v2186_v1  ;;  %v2183_v4 = vsel %vm472_vm4, %v2179_v24, 0.0  ;;  %v5342_v50 = vpack.c.bf16 %v577_v48, %v576_v47  ;;  %v578_v24 = vld [vmem:[%s6455_s3 + $0x20] sm:$0xff]  ;;  %v579_v1 = vld [vmem:[%s6455_s3 + $0x28] sm:$0xff] }
 0xb08   : > { %2184 = vadd.xlane.f32.xlu1 %v2183_v4  ;;  %v2170_v52 = vpop.xlane.xlu0 %2169  ;;  %v580_v4 = vld [vmem:[%s6455_s3 + $0x30] sm:$0xff] }
 0xb09   : > { %v2174_v53 = vmul.f32 0.03125, %v2170_v52  ;;  %v2181_v54 = vmul.f32 %v2177_v51, %v2177_v51  ;;  %v581_v52 = vld [vmem:[%s6455_s3 + $0x38] sm:$0xff] }
 0xb0b   : > { %v2178_v55 = vsub.f32 %v2158_v27, %v2174_v53  ;;  %v2189_v56 = vsel %vm472_vm4, %v2181_v54, 0.0  ;;  %v5350_v53 = vpack.c.bf16 %v581_v52, %v580_v4  ;;  %v2229_v54 = vsub.s32 4, %v5646_v6 }
 0xb0c   : > { %2190 = vadd.xlane.f32.xlu1 %v2189_v56  ;;  %v2366_v4 = vsub.s32 5, %v5646_v6 }
 0xb0d   : > { %v2182_v57 = vmul.f32 %v2178_v55, %v2178_v55 }
 0xb0e   : > { %v2367_v52 = vrot.slane %v5798_v5, %v2366_v4 }
 0xb0f   : > { %v2192_v58 = vsel %vm472_vm4, %v2182_v57, 0.0 }
 0xb10   : > { %2193 = vadd.xlane.f32.xlu0 %v2192_v58 }
 0xb94   : > { %v2188_v3 = vpop.xlane.xlu0 %2187 }
 0xb95   : > { %v2196_v7 = vmul.f32 0.03125, %v2188_v3  ;;  %v2185_v8 = vpop.xlane.xlu1 %2184 }
 0xb96   : > { %v2195_v11 = vmul.f32 0.03125, %v2185_v8 }
 0xb97   : > { %v2200_v14 = vadd.f32 1e-12, %v2196_v7 }
 0xb98   : > { %v2199_v17 = vadd.f32 1e-12, %v2195_v11 }
 0xb99   : > { %5480 = vrsqrt.f32 %v2200_v14  ;;  %v2191_v21 = vpop.xlane.xlu1 %2190 }
 0xb9a   : > { %5482 = vrsqrt.f32 %v2199_v17  ;;  %v2197_v23 = vmul.f32 0.03125, %v2191_v21 }
 0xb9c   : > { %v2201_v25 = vadd.f32 1e-12, %v2197_v23 }
 0xb9d   : > { %v2194_v26 = vpop.xlane.xlu0 %2193 }
 0xb9e   : > { %5484 = vrsqrt.f32 %v2201_v25  ;;  %v2198_v20 = vmul.f32 0.03125, %v2194_v26 }
 0xba0   : > { %v2202_v29 = vadd.f32 1e-12, %v2198_v20 }
 0xba2   : > { %5486 = vrsqrt.f32 %v2202_v29 }
 0xba3   : > { %v5481_v36 = vpop.eup %5480 }
 0xba4   : > { %v5483_v22 = vpop.eup %5482  ;;  %v2208_v37 = vmul.f32 %v5481_v36, %v2176_v46  ;;  %v575_v46 = vld [vmem:[%s6455_s3 + $0x8] sm:$0xff] }
 0xba5   : > { %v2207_v35 = vmul.f32 %v5483_v22, %v2175_v15  ;;  %v5338_v15 = vpack.c.bf16 %v575_v46, %v574_v19 }
 0xba6   : > { %v2216_v41 = vmul.f32 %v2214_v34, %v2208_v37 }
 0xba7   : > { %v2215_v13 = vmul.f32 %v2214_v34, %v2207_v35  ;;  %5339 = vmatprep.subr.bf16.mxu0 %v5338_v15 }
 0xba8   : > { %v5485_v43 = vpop.eup %5484  ;;  %v6023_v9 = vadd.f32 %v2222_v39, %v2216_v41  ;;  %5341 = vmatpush3.bf16.msra.mxu0 %v5338_v15 }
 0xba9   : > { %v6021_v45 = vadd.f32 %v2222_v39, %v2215_v13  ;;  %v2209_v42 = vmul.f32 %v5485_v43, %v2177_v51  ;;  %5343 = vmatprep.subr.bf16.mxu0 %v5342_v50  ;;  %v5346_v51 = vpack.c.bf16 %v579_v1, %v578_v24 }
 0xbab   : > { %5103 = vmatprep.mubr.msk.f32.mxu1 %vm472_vm4, %v6021_v45  ;;  %v2217_v18 = vmul.f32 %v2214_v34, %v2209_v42 }
 0xbac   : > { %v5487_v27 = vpop.eup %5486  ;;  %5104 = vmatmul.mubr.msk.f32.vlgmr.msra.gmra.mrb[28].mxu1 %vm472_vm4, %v6023_v9  ;;  %5345 = vmatpush3.bf16.msra.mxu0 %v5342_v50 }
 0xbad   : > { %v6029_v61 = vadd.f32 %v2222_v39, %v2217_v18  ;;  %v2210_v59 = vmul.f32 %v5487_v27, %v2178_v55  ;;  %5347 = vmatprep.subr.bf16.mxu0 %v5346_v51  ;;  %v2230_v55 = vrot.slane %v5798_v5, %v2229_v54 }
 0xbaf   : > { %5106 = vmatprep.mubr.msk.f32.mxu1 %vm472_vm4, %v6029_v61  ;;  %v2218_v28 = vmul.f32 %v2214_v34, %v2210_v59 }
 0xbb0   : > { %5349 = vmatpush3.bf16.msra.mxu0 %v5346_v51 }
 0xbb1   : > { %v6033_v31 = vadd.f32 %v2222_v39, %v2218_v28  ;;  %5351 = vmatprep.subr.bf16.mxu0 %v5350_v53 }
 0xbb3   : > { %5107 = vmatmul.mubr.msk.f32.gmra.mrb[30].mxu1 %vm472_vm4, %v6033_v31 }
 0xbb4   : > { %5353 = vmatpush3.bf16.msra.mxu0 %v5350_v53 }
 0xbb5   : > { %5155 = vmatprep.subr.mxu0 %v5577_v38 }
 0xc7f   : > { %v5105_v56 = vpop.f32.mrb[28].mxu1 }
 0xc80   : > { %v2315_v57 = vadd.f32 %v5105_v56, %v2230_v55  ;;  %v2309_v58 = vpop.f32.mrb[29].mxu1 }
 0xc81   : > { %v2310_v62 = vadd.f32 %v2309_v58, %v2230_v55 }
 0xc82   : > { %v2333_v63 = vmul.f32 0.044715, %v2315_v57  ;;  %v2329_v59 = vmul.f32 0.5, %v2315_v57 }
 0xc83   : > { %v2332_v32 = vmul.f32 0.044715, %v2310_v62  ;;  %v2328_v18 = vmul.f32 0.5, %v2310_v62 }
 0xc84   : > { %v2337_v33 = vmul.f32 %v2333_v63, %v2315_v57 }
 0xc85   : > { %v2336_v0 = vmul.f32 %v2332_v32, %v2310_v62 }
 0xc86   : > { %v2341_v2 = vmul.f32 %v2337_v33, %v2315_v57  ;;  %v5108_v3 = vpop.f32.mrb[30].mxu1 }
 0xc87   : > { %v2340_v7 = vmul.f32 %v2336_v0, %v2310_v62  ;;  %v2325_v8 = vadd.f32 %v5108_v3, %v2230_v55  ;;  %v2319_v11 = vpop.f32.mrb[31].mxu1 }
 0xc88   : > { %v2345_v14 = vadd.f32 %v2341_v2, %v2315_v57  ;;  %v2320_v17 = vadd.f32 %v2319_v11, %v2230_v55 }
 0xc89   : > { %v2344_v21 = vadd.f32 %v2340_v7, %v2310_v62  ;;  %v2335_v23 = vmul.f32 0.044715, %v2325_v8  ;;  %v2331_v24 = vmul.f32 0.5, %v2325_v8 }
 0xc8a   : > { %v2349_v25 = vmul.f32 0.7978846, %v2345_v14  ;;  %v2334_v26 = vmul.f32 0.044715, %v2320_v17  ;;  %v2330_v48 = vmul.f32 0.5, %v2320_v17 }
 0xc8b   : > { %v2339_v20 = vmul.f32 %v2335_v23, %v2325_v8  ;;  %v2348_v29 = vmul.f32 0.7978846, %v2344_v21 }
 0xc8c   : > { %5488 = vtanh.f32 %v2349_v25  ;;  %v2338_v34 = vmul.f32 %v2334_v26, %v2320_v17 }
 0xc8d   : > { %v2343_v36 = vmul.f32 %v2339_v20, %v2325_v8  ;;  %5490 = vtanh.f32 %v2348_v29 }
 0xc8e   : > { %v2342_v22 = vmul.f32 %v2338_v34, %v2320_v17 }
 0xc8f   : > { %v2347_v37 = vadd.f32 %v2343_v36, %v2325_v8 }
 0xc90   : > { %v2346_v35 = vadd.f32 %v2342_v22, %v2320_v17 }
 0xc91   : > { %v2351_v39 = vmul.f32 0.7978846, %v2347_v37 }
 0xc92   : > { %v2350_v41 = vmul.f32 0.7978846, %v2346_v35 }
 0xc93   : > { %5492 = vtanh.f32 %v2351_v39 }
 0xc94   : > { %5494 = vtanh.f32 %v2350_v41 }
 0xc96   : > { %v5489_v13 = vpop.eup %5488 }
 0xc97   : > { %v5491_v43 = vpop.eup %5490  ;;  %v2357_v42 = vadd.f32 1.0, %v5489_v13 }
 0xc98   : > { %v2356_v27 = vadd.f32 1.0, %v5491_v43  ;;  %v6091_v43 = vld [vmem:[%s6454_s2 + $0x40] sm:$0xff] }
 0xc99   : > { %v2361_v19 = vmul.f32 %v2357_v42, %v2329_v59  ;;  %v6096_v42 = vld [vmem:[%s6454_s2 + $0x50] sm:$0xff]  ;;  %v6105_v59 = vld [vmem:[%s6454_s2 + $0x60] sm:$0xff] }
 0xc9a   : > { %v2360_v28 = vmul.f32 %v2356_v27, %v2328_v18  ;;  %v5354_v18 = vpack.c.bf16 %v6096_v42, %v6091_v43  ;;  %v5430_v27 = vpack.i.bf16 %v6096_v42, %v6091_v43 }
 0xc9c   : > { %5125 = vmatprep.mubr.msk.f32.mxu0 %vm2368_vm7, %v2360_v28  ;;  %5355 = vmatprep.subr.bf16.mxu1 %v5354_v18  ;;  %v6110_v28 = vld [vmem:[%s6454_s2 + $0x70] sm:$0xff] }
 0xc9d   : > { %v5493_v46 = vpop.eup %5492  ;;  %5126 = vmatmul.mubr.msk.f32.vlgmr.msra.gmra.mrb[16].mxu0 %vm2368_vm7, %v2361_v19  ;;  %5357 = vmatpush3.bf16.msra.mxu1 %v5354_v18  ;;  %v5435_v19 = vpack.i.bf16 %v6110_v28, %v6105_v59 }
 0xc9e   : > { %v5495_v15 = vpop.eup %5494  ;;  %v2359_v47 = vadd.f32 1.0, %v5493_v46  ;;  %v5358_v46 = vpack.c.bf16 %v6110_v28, %v6105_v59 }
 0xc9f   : > { %v2358_v50 = vadd.f32 1.0, %v5495_v15 }
 0xca0   : > { %v2363_v51 = vmul.f32 %v2359_v47, %v2331_v24  ;;  %5359 = vmatprep.subr.bf16.mxu1 %v5358_v46 }
 0xca1   : > { %v2362_v1 = vmul.f32 %v2358_v50, %v2330_v48  ;;  %5361 = vmatpush3.bf16.msra.mxu1 %v5358_v46 }
 0xca2   : > { %5145 = vmatprep.subr.mxu1 %v5577_v38 }
 0xca3   : > { %5128 = vmatprep.mubr.msk.f32.mxu0 %vm2368_vm7, %v2362_v1 }
 0xca4   : > { %5129 = vmatmul.mubr.msk.f32.gmra.mrb[18].mxu0 %vm2368_vm7, %v2363_v51 }
 0xca5   : > { %5157 = vmatprep.mubr.msk.f32.mxu0 %vm5578_vm1, %v5577_v38 }
 0xd70   : > { %v5127_v53 = vpop.f32.mrb[16].mxu0 }
 0xd71   : > { %v2453_v55 = vadd.f32 %v5127_v53, %v2367_v52  ;;  %v2447_v56 = vpop.f32.mrb[17].mxu0 }
 0xd72   : > { %v2448_v57 = vadd.f32 %v2447_v56, %v2367_v52  ;;  %v2524_v56 = vsub.s32 6, %v5646_v6 }
 0xd73   : > { %v2467_v58 = vadd.f32 %v2453_v55, %v6023_v9 }
 0xd74   : > { %v2466_v62 = vadd.f32 %v2448_v57, %v6021_v45 }
 0xd75   : > { %v2473_v63 = vsel %vm472_vm4, %v2467_v58, 0.0 }
 0xd76   : > { %2474 = vadd.xlane.f32.xlu0 %v2473_v63  ;;  %v2470_v32 = vsel %vm472_vm4, %v2466_v62, 0.0  ;;  %v5566_v63 = vld [vmem:[%s6456_s4] sm:$0xff] }
 0xd77   : > { %2471 = vadd.xlane.f32.xlu1 %v2470_v32  ;;  %v5130_v33 = vpop.f32.mrb[18].mxu0  ;;  %v2525_v32 = vrot.slane %v5566_v63, %v2524_v56 }
 0xd78   : > { %v2463_v0 = vadd.f32 %v5130_v33, %v2367_v52  ;;  %v2457_v2 = vpop.f32.mrb[19].mxu0 }
 0xd79   : > { %v2458_v3 = vadd.f32 %v2457_v2, %v2367_v52 }
 0xd7a   : > { %v2469_v5 = vadd.f32 %v2463_v0, %v6033_v31 }
 0xd7b   : > { %v2468_v7 = vadd.f32 %v2458_v3, %v6029_v61 }
 0xd7c   : > { %v2479_v8 = vsel %vm472_vm4, %v2469_v5, 0.0 }
 0xd7d   : > { %2480 = vadd.xlane.f32.xlu0 %v2479_v8  ;;  %v2476_v9 = vsel %vm472_vm4, %v2468_v7, 0.0 }
 0xd7e   : > { %2477 = vadd.xlane.f32.xlu1 %v2476_v9 }
 0xe03   : > { %v2475_v45 = vpop.xlane.xlu0 %2474 }
 0xe04   : > { %v2483_v11 = vmul.f32 0.03125, %v2475_v45  ;;  %v2472_v14 = vpop.xlane.xlu1 %2471 }
 0xe05   : > { %v2482_v17 = vmul.f32 0.03125, %v2472_v14 }
 0xe06   : > { %v2487_v21 = vsub.f32 %v2467_v58, %v2483_v11 }
 0xe07   : > { %v2486_v23 = vsub.f32 %v2466_v62, %v2482_v17  ;;  %v2532_v62 = vsub.s32 7, %v5646_v6 }
 0xe08   : > { %v2491_v25 = vmul.f32 %v2487_v21, %v2487_v21 }
 0xe09   : > { %v2490_v26 = vmul.f32 %v2486_v23, %v2486_v23 }
 0xe0a   : > { %v2481_v20 = vpop.xlane.xlu0 %2480  ;;  %v2497_v29 = vsel %vm472_vm4, %v2491_v25, 0.0 }
 0xe0b   : > { %v2485_v31 = vmul.f32 0.03125, %v2481_v20  ;;  %v2478_v34 = vpop.xlane.xlu1 %2477  ;;  %2498 = vadd.xlane.f32.xlu0 %v2497_v29  ;;  %v2494_v61 = vsel %vm472_vm4, %v2490_v26, 0.0  ;;  %v6147_v29 = vld [vmem:[%s6456_s4 + $0x8] sm:$0xff] }
 0xe0c   : > { %v2484_v36 = vmul.f32 0.03125, %v2478_v34  ;;  %2495 = vadd.xlane.f32.xlu1 %v2494_v61 }
 0xe0d   : > { %v2489_v22 = vsub.f32 %v2469_v5, %v2485_v31  ;;  %v2533_v5 = vrot.slane %v5566_v63, %v2532_v62  ;;  %v2561_v31 = vrot.slane %v6147_v29, %v5661_v12 }
 0xe0e   : > { %v2488_v37 = vsub.f32 %v2468_v7, %v2484_v36 }
 0xe0f   : > { %v2493_v35 = vmul.f32 %v2489_v22, %v2489_v22 }
 0xe10   : > { %v2492_v39 = vmul.f32 %v2488_v37, %v2488_v37 }
 0xe11   : > { %v2503_v41 = vsel %vm472_vm4, %v2493_v35, 0.0 }
 0xe12   : > { %2504 = vadd.xlane.f32.xlu0 %v2503_v41  ;;  %v2500_v13 = vsel %vm472_vm4, %v2492_v39, 0.0 }
 0xe13   : > { %2501 = vadd.xlane.f32.xlu1 %v2500_v13 }
 0xe98   : > { %v2499_v15 = vpop.xlane.xlu0 %2498 }
 0xe99   : > { %v2507_v47 = vmul.f32 0.03125, %v2499_v15  ;;  %v2496_v48 = vpop.xlane.xlu1 %2495 }
 0xe9a   : > { %v2506_v50 = vmul.f32 0.03125, %v2496_v48 }
 0xe9b   : > { %v2511_v24 = vadd.f32 1e-12, %v2507_v47 }
 0xe9c   : > { %v2510_v1 = vadd.f32 1e-12, %v2506_v50 }
 0xe9d   : > { %5496 = vrsqrt.f32 %v2511_v24 }
 0xe9e   : > { %5498 = vrsqrt.f32 %v2510_v1 }
 0xe9f   : > { %v2505_v51 = vpop.xlane.xlu0 %2504 }
 0xea0   : > { %v2509_v52 = vmul.f32 0.03125, %v2505_v51  ;;  %v2502_v53 = vpop.xlane.xlu1 %2501 }
 0xea1   : > { %v2508_v55 = vmul.f32 0.03125, %v2502_v53 }
 0xea2   : > { %v2513_v57 = vadd.f32 1e-12, %v2509_v52 }
 0xea3   : > { %v2512_v58 = vadd.f32 1e-12, %v2508_v55 }
 0xea4   : > { %5500 = vrsqrt.f32 %v2513_v57 }
 0xea5   : > { %5502 = vrsqrt.f32 %v2512_v58 }
 0xea7   : > { %v5497_v33 = vpop.eup %5496 }
 0xea8   : > { %v5499_v0 = vpop.eup %5498  ;;  %v2519_v2 = vmul.f32 %v5497_v33, %v2487_v21 }
 0xea9   : > { %v2518_v3 = vmul.f32 %v5499_v0, %v2486_v23 }
 0xeaa   : > { %v2527_v7 = vmul.f32 %v2525_v32, %v2519_v2 }
 0xeab   : > { %v2526_v8 = vmul.f32 %v2525_v32, %v2518_v3 }
 0xeac   : > { %v6128_v11 = vadd.f32 %v2533_v5, %v2527_v7 }
 0xead   : > { %v6126_v9 = vadd.f32 %v2533_v5, %v2526_v8 }
 0xeae   : > { %v5501_v45 = vpop.eup %5500 }
 0xeaf   : > { %v5503_v14 = vpop.eup %5502  ;;  %5139 = vmatprep.mubr.msk.f32.mxu1 %vm472_vm4, %v6126_v9  ;;  %v2521_v17 = vmul.f32 %v5501_v45, %v2489_v22 }
 0xeb0   : > { %5140 = vmatmul.mubr.msk.f32.vlgmr.msra.gmra.mrb[32].mxu1 %vm472_vm4, %v6128_v11  ;;  %v2520_v21 = vmul.f32 %v5503_v14, %v2488_v37 }
 0xeb1   : > { %v2529_v23 = vmul.f32 %v2525_v32, %v2521_v17 }
 0xeb2   : > { %v2528_v25 = vmul.f32 %v2525_v32, %v2520_v21 }
 0xeb3   : > { %v6136_v20 = vadd.f32 %v2533_v5, %v2529_v23 }
 0xeb4   : > { %v6134_v26 = vadd.f32 %v2533_v5, %v2528_v25 }
 0xeb6   : > { %5142 = vmatprep.mubr.msk.f32.mxu1 %vm472_vm4, %v6134_v26 }
 0xeb7   : > { %5143 = vmatmul.mubr.msk.f32.gmra.mrb[34].mxu1 %vm472_vm4, %v6136_v20 }
 0xeb8   : > { %5147 = vmatprep.mubr.msk.f32.mxu1 %vm5578_vm1, %v5577_v38 }
 0xf83   : > { %v5141_v34 = vpop.f32.mrb[32].mxu1 }
 0xf84   : > { %v6151_v61 = vadd.f32 %v5141_v34, %v2561_v31  ;;  %v2640_v36 = vpop.f32.mrb[33].mxu1 }
 0xf85   : > { %v6153_v22 = vadd.f32 %v2640_v36, %v2561_v31 }
 0xf86   : > { %2737 = vrot.lane.b32.xlu0 %v6151_v61, %s5579_s26 }
 0xf87   : > { %2660 = vrot.lane.b32.xlu1 %v6153_v22, %s5579_s26 }
 0xf8a   : > { %3095 = vrot.lane.b32.xlu0 %v6151_v61, %s5580_s27  ;;  %v5144_v37 = vpop.f32.mrb[34].mxu1 }
 0xf8b   : > { %v2650_v35 = vpop.f32.mrb[35].mxu1  ;;  %v6165_v41 = vadd.f32 %v5144_v37, %v2561_v31 }
 0xf8c   : > { %v6161_v39 = vadd.f32 %v2650_v35, %v2561_v31 }
 0xf8e   : > { %2814 = vrot.lane.b32.xlu1 %v6161_v39, %s5579_s26 }
 0xf92   : > { %2891 = vrot.lane.b32.xlu1 %v6165_v41, %s5579_s26 }
 0xf96   : > { %3019 = vrot.lane.b32.xlu1 %v6153_v22, %s5580_s27 }
 0xf9a   : > { %3247 = vrot.lane.b32.xlu1 %v6165_v41, %s5580_s27 }
 0xf9e   : > { %3171 = vrot.lane.b32.xlu1 %v6161_v39, %s5580_s27 }
 0xff8   : > { %v2738_v18 = vpop.permute.xlu0 %2737 }
 0xff9   : > { %v2661_v13 = vpop.permute.xlu1 %2660 }
 0xffa   : > { %5146 = vmatpush3.xpose.msk.msra.mxu1 %vm687_vm5, %v2661_v13 }
 0xffb   : > { %5150 = vmatprep.subr.mxu1 %v5577_v38 }
 0xffc   : > { %v3096_v47 = vpop.permute.xlu0 %3095 }
 0xffd   : > { %5148 = vmatmul.mubr.msk.f32.vlgmr.msra.gmra.mrb[36].mxu1 %vm687_vm5, %v6153_v22 }
 0xffe   : > { %5151 = vmatpush3.xpose.msk.msra.mxu1 %vm687_vm5, %v2738_v18  ;;  %5152 = vmatprep.mubr.msk.f32.mxu1 %vm5578_vm1, %v5577_v38 }
 0xfff   : > { %5160 = vmatprep.subr.mxu1 %v5577_v38 }
0x1000   : > { %v2815_v46 = vpop.permute.xlu1 %2814 }
0x1001   : > { %5153 = vmatmul.mubr.msk.f32.vlgmr.msra.gmra.mrb[38].mxu1 %vm687_vm5, %v6151_v61  ;;  %5156 = vmatpush3.xpose.msk.msra.mxu0 %vm687_vm5, %v2815_v46 }
0x1002   : > { %5162 = vmatprep.mubr.msk.f32.mxu1 %vm5578_vm1, %v5577_v38  ;;  %5165 = vmatprep.subr.mxu0 %v5577_v38 }
0x1004   : > { %5158 = vmatmul.mubr.msk.f32.vlgmr.msra.gmra.mrb[20].mxu0 %vm687_vm5, %v6161_v39  ;;  %v2892_v15 = vpop.permute.xlu1 %2891 }
0x1005   : > { %5161 = vmatpush3.xpose.msk.msra.mxu1 %vm687_vm5, %v2892_v15  ;;  %5167 = vmatprep.mubr.msk.f32.mxu0 %vm5578_vm1, %v5577_v38 }
0x1006   : > { %5170 = vmatprep.subr.mxu1 %v5577_v38 }
0x1008   : > { %v3020_v48 = vpop.permute.xlu1 %3019  ;;  %5163 = vmatmul.mubr.msk.f32.vlgmr.msra.gmra.mrb[40].mxu1 %vm687_vm5, %v6165_v41 }
0x1009   : > { %5166 = vmatpush3.msra.mxu0 %v3020_v48  ;;  %5171 = vmatpush3.msra.mxu1 %v3096_v47 }
0x100a   : > { %5175 = vmatprep.subr.mxu0 %v5577_v38  ;;  %5172 = vmatprep.mubr.msk.f32.mxu1 %vm5578_vm1, %v5577_v38 }
0x100b   : > { %5180 = vmatprep.subr.mxu1 %v5577_v38 }
0x100c   : > { %v3248_v17 = vpop.permute.xlu1 %3247 }
0x1010   : > { %v3172_v21 = vpop.permute.xlu1 %3171 }
0x10d0   : > { %v2732_v50 = vpop.f32.mrb[36].mxu1 }
0x10d1   : > { %v2967_v24 = vmul.f32 0.25, %v2732_v50  ;;  %v5149_v1 = vpop.f32.mrb[37].mxu1 }
0x10d3   : > { %v2971_v51 = vadd.f32 %v2967_v24, %v5849_v40 }
0x10d4   : > { %v2809_v52 = vpop.f32.mrb[38].mxu1 }
0x10d5   : > { %v2968_v53 = vmul.f32 0.25, %v2809_v52  ;;  %v5154_v55 = vpop.f32.mrb[39].mxu1  ;;  %v2975_v57 = vsel %vm1001_vm6, %v2971_v51, -inf }
0x10d6   : > { %2976 = vmax.xlane.f32.xlu0 %v2975_v57 }
0x10d7   : > { %v2886_v58 = vpop.f32.mrb[20].mxu0  ;;  %v2972_v63 = vadd.f32 %v2968_v53, %v5853_v16 }
0x10d8   : > { %v2969_v32 = vmul.f32 0.25, %v2886_v58  ;;  %v5159_v33 = vpop.f32.mrb[21].mxu0 }
0x10d9   : > { %v2978_v0 = vsel %vm1001_vm6, %v2972_v63, -inf }
0x10da   : > { %2979 = vmax.xlane.f32.xlu1 %v2978_v0  ;;  %v2973_v2 = vadd.f32 %v2969_v32, %v5859_v30 }
0x10db   : > { %v2963_v3 = vpop.f32.mrb[40].mxu1 }
0x10dc   : > { %v2970_v5 = vmul.f32 0.25, %v2963_v3  ;;  %v5164_v7 = vpop.f32.mrb[41].mxu1  ;;  %v2981_v8 = vsel %vm1001_vm6, %v2973_v2, -inf }
0x10dd   : > { %2982 = vmax.xlane.f32.xlu0 %v2981_v8 }
0x10de   : > { %v2974_v45 = vadd.f32 %v2970_v5, %v5863_v60 }
0x10e0   : > { %v2984_v14 = vsel %vm1001_vm6, %v2974_v45, -inf }
0x10e1   : > { %2985 = vmax.xlane.f32.xlu0 %v2984_v14 }
0x10eb   : > { %3403 = vrot.lane.b32.xlu1 %v6151_v61, %s5581_s28 }
0x10f7   : > { %3325 = vrot.lane.b32.xlu0 %v6153_v22, %s5581_s28 }
0x1163   : > { %v2977_v23 = vpop.xlane.xlu0 %2976 }
0x1164   : > { %v2987_v25 = vsub.f32 %v2971_v51, %v2977_v23 }
0x1166   : > { %v2991_v31 = vmul.f32 1.442695, %v2987_v25 }
0x1167   : > { %v2980_v34 = vpop.xlane.xlu1 %2979 }
0x1168   : > { %5504 = vpow2.f32 %v2991_v31  ;;  %v2988_v36 = vsub.f32 %v2972_v63, %v2980_v34 }
0x116a   : > { %v2993_v37 = vmul.f32 1.442695, %v2988_v36  ;;  %v2983_v15 = vpop.xlane.xlu0 %2982 }
0x116b   : > { %v2989_v47 = vsub.f32 %v2973_v2, %v2983_v15  ;;  %v3404_v57 = vpop.permute.xlu1 %3403 }
0x116c   : > { %5506 = vpow2.f32 %v2993_v37 }
0x116d   : > { %v2995_v50 = vmul.f32 1.442695, %v2989_v47 }
0x116e   : > { %v2986_v48 = vpop.xlane.xlu0 %2985 }
0x116f   : > { %v2990_v24 = vsub.f32 %v2974_v45, %v2986_v48  ;;  %5508 = vpow2.f32 %v2995_v50 }
0x1171   : > { %v2997_v1 = vmul.f32 1.442695, %v2990_v24 }
0x1172   : > { %v5505_v35 = vpop.eup %5504  ;;  %v3326_v58 = vpop.permute.xlu0 %3325 }
0x1173   : > { %v2999_v13 = vsel %vm1001_vm6, %v5505_v35, 0.0  ;;  %5510 = vpow2.f32 %v2997_v1 }
0x1174   : > { %3000 = vadd.xlane.f32.xlu1 %v2999_v13 }
0x1176   : > { %v5507_v18 = vpop.eup %5506 }
0x1177   : > { %v3002_v46 = vsel %vm1001_vm6, %v5507_v18, 0.0 }
0x1178   : > { %3003 = vadd.xlane.f32.xlu0 %v3002_v46 }
0x1179   : > { %v5509_v51 = vpop.eup %5508 }
0x117a   : > { %v3005_v52 = vsel %vm1001_vm6, %v5509_v51, 0.0 }
0x117d   : > { %v5511_v53 = vpop.eup %5510 }
0x117e   : > { %v3008_v55 = vsel %vm1001_vm6, %v5511_v53, 0.0 }
0x1185   : > { %3401 = vrot.lane.b32.xlu1 %v6151_v61, %s5582_s29 }
0x118e   : > { %3323 = vrot.lane.b32.xlu0 %v6153_v22, %s5582_s29 }
0x11a9   : > { %3006 = vadd.xlane.f32.xlu1 %v3005_v52 }
0x11ad   : > { %3009 = vadd.xlane.f32.xlu0 %v3008_v55 }
0x11ba   : > { %3559 = vrot.lane.b32.xlu1 %v6165_v41, %s5581_s28 }
0x11be   : > { %3557 = vrot.lane.b32.xlu1 %v6165_v41, %s5582_s29 }
0x11c3   : > { %3481 = vrot.lane.b32.xlu0 %v6161_v39, %s5581_s28 }
0x11c7   : > { %3479 = vrot.lane.b32.xlu0 %v6161_v39, %s5582_s29 }
0x1201   : > { %v3001_v63 = vpop.xlane.xlu1 %3000 }
0x1202   : > { %5512 = vrcp.f32 %v3001_v63 }
0x1205   : > { %v3004_v32 = vpop.xlane.xlu0 %3003  ;;  %v3402_v5 = vpop.permute.xlu1 %3401 }
0x1206   : > { %5514 = vrcp.f32 %v3004_v32 }
0x1209   : > { %v3324_v7 = vpop.permute.xlu0 %3323 }
0x120c   : > { %v5513_v33 = vpop.eup %5512 }
0x120d   : > { %v3015_v0 = vmul.f32 %v5513_v33, %v5505_v35 }
0x120f   : > { %5168 = vmatmul.mubr.msk.f32.vlgmr.msra.gmra.mrb[22].mxu0 %vm1001_vm6, %v3015_v0 }
0x1210   : > { %v5515_v2 = vpop.eup %5514  ;;  %5176 = vmatpush3.msra.mxu0 %v3172_v21  ;;  %5177 = vmatprep.mubr.msk.f32.mxu0 %vm5578_vm1, %v5577_v38 }
0x1211   : > { %v3016_v3 = vmul.f32 %v5515_v2, %v5507_v18  ;;  %5185 = vmatprep.subr.mxu0 %v5577_v38 }
0x1213   : > { %5173 = vmatmul.mubr.msk.f32.vlgmr.msra.gmra.mrb[42].mxu1 %vm1001_vm6, %v3016_v3 }
0x1214   : > { %5181 = vmatpush3.msra.mxu1 %v3248_v17  ;;  %5182 = vmatprep.mubr.msk.f32.mxu1 %vm5578_vm1, %v5577_v38 }
0x1215   : > { %5190 = vmatprep.subr.mxu1 %v5577_v38 }
0x1236   : > { %v3007_v8 = vpop.xlane.xlu1 %3006 }
0x1237   : > { %5516 = vrcp.f32 %v3007_v8 }
0x123a   : > { %v3010_v45 = vpop.xlane.xlu0 %3009  ;;  %v3560_v31 = vpop.permute.xlu1 %3559 }
0x123b   : > { %5518 = vrcp.f32 %v3010_v45 }
0x123e   : > { %v3482_v25 = vpop.permute.xlu0 %3481  ;;  %v3558_v36 = vpop.permute.xlu1 %3557 }
0x1241   : > { %v5517_v14 = vpop.eup %5516 }
0x1242   : > { %v3017_v21 = vmul.f32 %v5517_v14, %v5509_v51  ;;  %v3480_v34 = vpop.permute.xlu0 %3479 }
0x1244   : > { %5178 = vmatmul.mubr.msk.f32.vlgmr.msra.gmra.mrb[24].mxu0 %vm1001_vm6, %v3017_v21 }
0x1245   : > { %v5519_v23 = vpop.eup %5518  ;;  %5186 = vmatpush3.xpose.msk.msra.mxu0 %vm687_vm5, %v3326_v58  ;;  %5187 = vmatprep.mubr.msk.f32.mxu0 %vm5578_vm1, %v5577_v38 }
0x1246   : > { %v3018_v17 = vmul.f32 %v5519_v23, %v5511_v53  ;;  %5195 = vmatprep.subr.mxu0 %v5577_v38 }
0x1248   : > { %5183 = vmatmul.mubr.msk.f32.vlgmr.msra.gmra.mrb[44].mxu1 %vm1001_vm6, %v3018_v17  ;;  %5188 = vmatmul.mubr.msk.f32.vlgmr.msra.gmra.mrb[26].mxu0 %vm687_vm5, %v3324_v7 }
0x1249   : > { %5191 = vmatpush3.xpose.msk.msra.mxu1 %vm687_vm5, %v3404_v57  ;;  %5196 = vmatpush3.xpose.msk.msra.mxu0 %vm687_vm5, %v3482_v25 }
0x124a   : > { %5192 = vmatprep.mubr.msk.f32.mxu1 %vm5578_vm1, %v5577_v38  ;;  %5197 = vmatprep.mubr.msk.f32.mxu0 %vm5578_vm1, %v5577_v38 }
0x124b   : > { %5200 = vmatprep.subr.mxu1 %v5577_v38  ;;  %5205 = vmatprep.subr.mxu0 %v5577_v38 }
0x124c   : > { %5193 = vmatmul.mubr.msk.f32.vlgmr.msra.gmra.mrb[46].mxu1 %vm687_vm5, %v3402_v5  ;;  %5198 = vmatmul.mubr.msk.f32.vlgmr.msra.gmra.mrb[28].mxu0 %vm687_vm5, %v3480_v34 }
0x124d   : > { %5201 = vmatpush3.xpose.msk.msra.mxu1 %vm687_vm5, %v3560_v31  ;;  %5202 = vmatprep.mubr.msk.f32.mxu1 %vm5578_vm1, %v5577_v38 }
0x124e   : > { %5210 = vmatprep.subr.mxu1 %v5577_v38  ;;  %5207 = vmatprep.mubr.msk.f32.mxu0 %vm5578_vm1, %v5577_v38 }
0x1250   : > { %5203 = vmatmul.mubr.msk.f32.vlgmr.msra.gmra.mrb[48].mxu1 %vm687_vm5, %v3558_v36 }
0x1251   : > { %5212 = vmatprep.mubr.msk.f32.mxu1 %vm5578_vm1, %v5577_v38 }
0x12e2   : > { %v6263_v37 = vpop.f32.mrb[22].mxu0 }
0x12e3   : > { %v5169_v35 = vpop.f32.mrb[23].mxu0 }
0x12e6   : > { %v6265_v13 = vpop.f32.mrb[42].mxu1 }
0x12e7   : > { %v5174_v18 = vpop.f32.mrb[43].mxu1 }
0x1317   : > { %v6267_v46 = vpop.f32.mrb[24].mxu0 }
0x1318   : > { %v5179_v15 = vpop.f32.mrb[25].mxu0 }
0x131b   : > { %v6269_v47 = vpop.f32.mrb[44].mxu1  ;;  %v3397_v48 = vpop.f32.mrb[26].mxu0 }
0x131c   : > { %v3635_v50 = vmul.f32 0.25, %v3397_v48  ;;  %v5184_v24 = vpop.f32.mrb[45].mxu1  ;;  %v5189_v1 = vpop.f32.mrb[27].mxu0 }
0x131e   : > { %v3639_v51 = vadd.f32 %v3635_v50, %v5849_v40 }
0x131f   : > { %v3475_v52 = vpop.f32.mrb[46].mxu1  ;;  %v3553_v53 = vpop.f32.mrb[28].mxu0 }
0x1320   : > { %v3636_v55 = vmul.f32 0.25, %v3475_v52  ;;  %v3637_v57 = vmul.f32 0.25, %v3553_v53  ;;  %v5194_v58 = vpop.f32.mrb[47].mxu1  ;;  %v5199_v63 = vpop.f32.mrb[29].mxu0  ;;  %v3643_v32 = vsel %vm1001_vm6, %v3639_v51, -inf }
0x1321   : > { %3644 = vmax.xlane.f32.xlu0 %v3643_v32 }
0x1322   : > { %v3640_v33 = vadd.f32 %v3636_v55, %v5853_v16  ;;  %v3641_v0 = vadd.f32 %v3637_v57, %v5859_v30 }
0x1323   : > { %v3631_v2 = vpop.f32.mrb[48].mxu1 }
0x1324   : > { %v3638_v3 = vmul.f32 0.25, %v3631_v2  ;;  %v5204_v5 = vpop.f32.mrb[49].mxu1  ;;  %v3646_v7 = vsel %vm1001_vm6, %v3640_v33, -inf  ;;  %v3649_v40 = vsel %vm1001_vm6, %v3641_v0, -inf }
0x1325   : > { %3647 = vmax.xlane.f32.xlu1 %v3646_v7  ;;  %3650 = vmax.xlane.f32.xlu0 %v3649_v40 }
0x1326   : > { %v3642_v8 = vadd.f32 %v3638_v3, %v5863_v60 }
0x1328   : > { %v3652_v45 = vsel %vm1001_vm6, %v3642_v8, -inf }
0x1329   : > { %3653 = vmax.xlane.f32.xlu0 %v3652_v45 }
0x1336   : > { %3687 = vrot.lane.b32.xlu1 %v6153_v22, %s5583_s30 }
0x13ae   : > { %v3645_v16 = vpop.xlane.xlu0 %3644 }
0x13af   : > { %v3655_v14 = vsub.f32 %v3639_v51, %v3645_v16 }
0x13b1   : > { %v3659_v30 = vmul.f32 1.442695, %v3655_v14 }
0x13b2   : > { %v3648_v21 = vpop.xlane.xlu1 %3647  ;;  %v3651_v23 = vpop.xlane.xlu0 %3650 }
0x13b3   : > { %5520 = vpow2.f32 %v3659_v30  ;;  %v3656_v25 = vsub.f32 %v3640_v33, %v3648_v21  ;;  %v3657_v17 = vsub.f32 %v3641_v0, %v3651_v23 }
0x13b5   : > { %v3661_v31 = vmul.f32 1.442695, %v3656_v25  ;;  %v3663_v34 = vmul.f32 1.442695, %v3657_v17 }
0x13b6   : > { %v3688_v36 = vpop.permute.xlu1 %3687  ;;  %v3654_v35 = vpop.xlane.xlu0 %3653 }
0x13b7   : > { %5522 = vpow2.f32 %v3661_v31  ;;  %v3658_v60 = vsub.f32 %v3642_v8, %v3654_v35  ;;  %5206 = vmatpush3.msra.mxu0 %v3688_v36 }
0x13b8   : > { %5524 = vpow2.f32 %v3663_v34  ;;  %5215 = vmatprep.subr.mxu0 %v5577_v38 }
0x13b9   : > { %v3665_v18 = vmul.f32 1.442695, %v3658_v60 }
0x13bb   : > { %5526 = vpow2.f32 %v3665_v18 }
0x13bd   : > { %v5521_v22 = vpop.eup %5520 }
0x13be   : > { %v3667_v15 = vsel %vm1001_vm6, %v5521_v22, 0.0 }
0x13bf   : > { %3668 = vadd.xlane.f32.xlu1 %v3667_v15 }
0x13c1   : > { %v5523_v48 = vpop.eup %5522 }
0x13c2   : > { %v5525_v50 = vpop.eup %5524  ;;  %v3670_v24 = vsel %vm1001_vm6, %v5523_v48, 0.0 }
0x13c3   : > { %3671 = vadd.xlane.f32.xlu0 %v3670_v24  ;;  %v3673_v1 = vsel %vm1001_vm6, %v5525_v50, 0.0 }
0x13c4   : > { %3674 = vadd.xlane.f32.xlu1 %v3673_v1 }
0x13c5   : > { %v5527_v51 = vpop.eup %5526 }
0x13c6   : > { %v3676_v52 = vsel %vm1001_vm6, %v5527_v51, 0.0 }
0x13c7   : > { %3677 = vadd.xlane.f32.xlu0 %v3676_v52 }
0x13d5   : > { %3839 = vrot.lane.b32.xlu1 %v6161_v39, %s5583_s30 }
0x13d9   : > { %3915 = vrot.lane.b32.xlu1 %v6165_v41, %s5583_s30 }
0x13dd   : > { %3763 = vrot.lane.b32.xlu0 %v6151_v61, %s5583_s30  ;;  %5436 = vrot.lane.b32.xlu1 %v5435_v19, %s5584_s7 }
0x13e1   : > { %5431 = vrot.lane.b32.xlu0 %v5430_v27, %s5584_s7 }
0x144c   : > { %v3669_v53 = vpop.xlane.xlu1 %3668 }
0x144d   : > { %5528 = vrcp.f32 %v3669_v53 }
0x1450   : > { %v3672_v55 = vpop.xlane.xlu0 %3671 }
0x1451   : > { %v3675_v39 = vpop.xlane.xlu1 %3674  ;;  %5530 = vrcp.f32 %v3672_v55 }
0x1452   : > { %5532 = vrcp.f32 %v3675_v39 }
0x1454   : > { %v3678_v41 = vpop.xlane.xlu0 %3677 }
0x1455   : > { %5534 = vrcp.f32 %v3678_v41  ;;  %v3840_v58 = vpop.permute.xlu1 %3839 }
0x1457   : > { %v5529_v57 = vpop.eup %5528 }
0x1458   : > { %v3683_v61 = vmul.f32 %v5529_v57, %v5521_v22  ;;  %v3764_v63 = vpop.permute.xlu0 %3763 }
0x1459   : > { %5211 = vmatpush3.msra.mxu1 %v3764_v63  ;;  %v3916_v28 = vpop.permute.xlu1 %3915 }
0x145a   : > { %5208 = vmatmul.mubr.msk.f32.vlgmr.msra.gmra.mrb[30].mxu0 %vm1001_vm6, %v3683_v61  ;;  %5220 = vmatprep.subr.mxu1 %v5577_v38 }
0x145b   : > { %v5531_v59 = vpop.eup %5530  ;;  %5216 = vmatpush3.msra.mxu0 %v3840_v58  ;;  %5217 = vmatprep.mubr.msk.f32.mxu0 %vm5578_vm1, %v5577_v38 }
0x145c   : > { %v5533_v43 = vpop.eup %5532  ;;  %v3684_v42 = vmul.f32 %v5531_v59, %v5523_v48  ;;  %v5432_v33 = vpop.permute.xlu0 %5431 }
0x145d   : > { %v3685_v27 = vmul.f32 %v5533_v43, %v5525_v50  ;;  %v5437_v0 = vpop.permute.xlu1 %5436  ;;  %v5434_v2 = vunpack.i.h.bf16 %v5432_v33  ;;  %v5433_v3 = vunpack.i.l.bf16 %v5432_v33 }
0x145e   : > { %5213 = vmatmul.mubr.msk.f32.vlgmr.msra.gmra.mrb[50].mxu1 %vm1001_vm6, %v3684_v42  ;;  %v5439_v5 = vunpack.i.h.bf16 %v5437_v0  ;;  %v5438_v7 = vunpack.i.l.bf16 %v5437_v0 }
0x145f   : > { %v5535_v19 = vpop.eup %5534  ;;  %5218 = vmatmul.mubr.msk.f32.vlgmr.msra.gmra.mrb[32].mxu0 %vm1001_vm6, %v3685_v27  ;;  %5221 = vmatpush3.msra.mxu1 %v3916_v28  ;;  %v5362_v40 = vpack.c.bf16 %v5434_v2, %v5433_v3 }
0x1460   : > { %v3686_v32 = vmul.f32 %v5535_v19, %v5527_v51  ;;  %5222 = vmatprep.mubr.msk.f32.mxu1 %vm5578_vm1, %v5577_v38  ;;  %v5366_v8 = vpack.c.bf16 %v5439_v5, %v5438_v7 }
0x1461   : > { %5363 = vmatprep.subr.bf16.mxu0 %v5362_v40 }
0x1462   : > { %5223 = vmatmul.mubr.msk.f32.vlgmr.msra.gmra.mrb[52].mxu1 %vm1001_vm6, %v3686_v32  ;;  %5365 = vmatpush3.bf16.msra.mxu0 %v5362_v40 }
0x1463   : > { %5367 = vmatprep.subr.bf16.mxu0 %v5366_v8 }
0x1466   : > { %5369 = vmatpush3.bf16.msra.mxu0 %v5366_v8 }
0x152d   : > { %v3759_v45 = vpop.f32.mrb[30].mxu0 }
0x152e   : > { %v5209_v16 = vpop.f32.mrb[31].mxu0  ;;  %3995 = vrot.lane.b32.xlu0 %v3759_v45, %s5585_s8  ;;  %v4732_v45 = vld [vmem:[%s6454_s2 + $0x48] sm:$0xff] }
0x152f   : > { %v4734_v16 = vld [vmem:[%s6454_s2 + $0x58] sm:$0xff] }
0x1531   : > { %v3835_v14 = vpop.f32.mrb[50].mxu1 }
0x1532   : > { %v3911_v30 = vpop.f32.mrb[32].mxu0  ;;  %3997 = vrot.lane.b32.xlu1 %v3835_v14, %s5585_s8  ;;  %v5214_v21 = vpop.f32.mrb[51].mxu1  ;;  %v5370_v14 = vpack.c.bf16 %v4734_v16, %v4732_v45 }
0x1533   : > { %v5219_v23 = vpop.f32.mrb[33].mxu0  ;;  %3999 = vrot.lane.b32.xlu0 %v3911_v30, %s5585_s8  ;;  %v4736_v30 = vld [vmem:[%s6454_s2 + $0x68] sm:$0xff]  ;;  %v4738_v21 = vld [vmem:[%s6454_s2 + $0x78] sm:$0xff] }
0x1534   : > { %5371 = vmatprep.subr.bf16.mxu1 %v5370_v14  ;;  %v5374_v23 = vpack.c.bf16 %v4738_v21, %v4736_v30 }
0x1535   : > { %v3987_v25 = vpop.f32.mrb[52].mxu1  ;;  %5373 = vmatpush3.bf16.msra.mxu1 %v5370_v14 }
0x1536   : > { %4001 = vrot.lane.b32.xlu1 %v3987_v25, %s5585_s8  ;;  %v5224_v17 = vpop.f32.mrb[53].mxu1  ;;  %5375 = vmatprep.subr.bf16.mxu1 %v5374_v23 }
0x1539   : > { %5377 = vmatpush3.bf16.msra.mxu1 %v5374_v23 }
0x15a0   : > { %v3996_v31 = vpop.permute.xlu0 %3995 }
0x15a1   : > { %v4007_v34 = vsel %vm687_vm5, %v6263_v37, %v3996_v31  ;;  %v4014_v37 = vrot.slane %v6147_v29, %v5655_v10 }
0x15a2   : > { %5233 = vmatprep.mubr.msk.f32.mxu0 %vm472_vm4, %v4007_v34 }
0x15a4   : > { %v3998_v36 = vpop.permute.xlu1 %3997 }
0x15a5   : > { %v4008_v35 = vsel %vm687_vm5, %v6265_v13, %v3998_v36  ;;  %v4000_v60 = vpop.permute.xlu0 %3999 }
0x15a6   : > { %v4009_v18 = vsel %vm687_vm5, %v6267_v46, %v4000_v60  ;;  %5234 = vmatmul.mubr.msk.f32.vlgmr.msra.gmra.mrb[34].mxu0 %vm472_vm4, %v4008_v35 }
0x15a7   : > { %5236 = vmatprep.mubr.msk.f32.mxu0 %vm472_vm4, %v4009_v18 }
0x15a8   : > { %v4002_v22 = vpop.permute.xlu1 %4001 }
0x15a9   : > { %v4010_v15 = vsel %vm687_vm5, %v6269_v47, %v4002_v22 }
0x15aa   : > { %5237 = vmatmul.mubr.msk.f32.gmra.mrb[36].mxu0 %vm472_vm4, %v4010_v15 }
0x1679   : > { %v5235_v48 = vpop.f32.mrb[34].mxu0 }
0x167a   : > { %v4115_v50 = vadd.f32 %v5235_v48, %v4014_v37  ;;  %v4109_v13 = vpop.f32.mrb[35].mxu0 }
0x167b   : > { %v4110_v24 = vadd.f32 %v4109_v13, %v4014_v37 }
0x167c   : > { %v4129_v1 = vadd.f32 %v4115_v50, %v6128_v11  ;;  %v4187_v50 = vrot.slane %v6147_v29, %v5765_v44 }
0x167d   : > { %v4128_v46 = vadd.f32 %v4110_v24, %v6126_v9  ;;  %v5238_v51 = vpop.f32.mrb[36].mxu0 }
0x167e   : > { %v4119_v52 = vpop.f32.mrb[37].mxu0  ;;  %v4135_v53 = vsel %vm472_vm4, %v4129_v1, 0.0  ;;  %v4125_v55 = vadd.f32 %v5238_v51, %v4014_v37  ;;  %v4195_v51 = vrot.slane %v6147_v29, %v5771_v49 }
0x167f   : > { %v4120_v39 = vadd.f32 %v4119_v52, %v4014_v37  ;;  %4136 = vadd.xlane.f32.xlu1 %v4135_v53  ;;  %v4132_v47 = vsel %vm472_vm4, %v4128_v46, 0.0 }
0x1680   : > { %4133 = vadd.xlane.f32.xlu0 %v4132_v47  ;;  %v4131_v57 = vadd.f32 %v4125_v55, %v6136_v20 }
0x1681   : > { %v4130_v41 = vadd.f32 %v4120_v39, %v6134_v26 }
0x1682   : > { %v4141_v11 = vsel %vm472_vm4, %v4131_v57, 0.0 }
0x1683   : > { %v4138_v61 = vsel %vm472_vm4, %v4130_v41, 0.0 }
0x1684   : > { %4139 = vadd.xlane.f32.xlu0 %v4138_v61 }
0x1688   : > { %4142 = vadd.xlane.f32.xlu0 %v4141_v11 }
0x170c   : > { %v4137_v9 = vpop.xlane.xlu1 %4136 }
0x170d   : > { %v4145_v58 = vmul.f32 0.03125, %v4137_v9  ;;  %v4134_v63 = vpop.xlane.xlu0 %4133 }
0x170e   : > { %v4144_v59 = vmul.f32 0.03125, %v4134_v63  ;;  %v4740_v63 = vld [vmem:[%s6455_s3 + $0x48] sm:$0xff] }
0x170f   : > { %v4149_v43 = vsub.f32 %v4129_v1, %v4145_v58  ;;  %v4739_v58 = vld [vmem:[%s6455_s3 + $0x40] sm:$0xff] }
0x1710   : > { %v4148_v42 = vsub.f32 %v4128_v46, %v4144_v59  ;;  %v5378_v59 = vpack.c.bf16 %v4740_v63, %v4739_v58 }
0x1711   : > { %v4140_v27 = vpop.xlane.xlu0 %4139  ;;  %v4153_v28 = vmul.f32 %v4149_v43, %v4149_v43 }
0x1712   : > { %v4146_v19 = vmul.f32 0.03125, %v4140_v27  ;;  %v4152_v32 = vmul.f32 %v4148_v42, %v4148_v42  ;;  %5379 = vmatprep.subr.bf16.mxu0 %v5378_v59  ;;  %v4743_v27 = vld [vmem:[%s6455_s3 + $0x60] sm:$0xff] }
0x1713   : > { %v4159_v26 = vsel %vm472_vm4, %v4153_v28, 0.0  ;;  %5381 = vmatpush3.bf16.msra.mxu0 %v5378_v59  ;;  %v4744_v28 = vld [vmem:[%s6455_s3 + $0x68] sm:$0xff] }
0x1714   : > { %v4150_v33 = vsub.f32 %v4130_v41, %v4146_v19  ;;  %4160 = vadd.xlane.f32.xlu0 %v4159_v26  ;;  %v4156_v20 = vsel %vm472_vm4, %v4152_v32, 0.0  ;;  %v5386_v19 = vpack.c.bf16 %v4744_v28, %v4743_v27  ;;  %v4745_v32 = vld [vmem:[%s6455_s3 + $0x70] sm:$0xff]  ;;  %v4746_v26 = vld [vmem:[%s6455_s3 + $0x78] sm:$0xff] }
0x1715   : > { %4157 = vadd.xlane.f32.xlu1 %v4156_v20  ;;  %v4143_v0 = vpop.xlane.xlu0 %4142  ;;  %v4203_v20 = vrot.slane %v6147_v29, %v2229_v54 }
0x1716   : > { %v4147_v2 = vmul.f32 0.03125, %v4143_v0  ;;  %v4154_v3 = vmul.f32 %v4150_v33, %v4150_v33 }
0x1718   : > { %v4151_v5 = vsub.f32 %v4131_v57, %v4147_v2  ;;  %v4162_v7 = vsel %vm472_vm4, %v4154_v3, 0.0 }
0x1719   : > { %4163 = vadd.xlane.f32.xlu1 %v4162_v7 }
0x171a   : > { %v4155_v40 = vmul.f32 %v4151_v5, %v4151_v5 }
0x171c   : > { %v4165_v8 = vsel %vm472_vm4, %v4155_v40, 0.0 }
0x171d   : > { %4166 = vadd.xlane.f32.xlu0 %v4165_v8 }
0x17a1   : > { %v4161_v25 = vpop.xlane.xlu0 %4160 }
0x17a2   : > { %v4169_v17 = vmul.f32 0.03125, %v4161_v25  ;;  %v4158_v31 = vpop.xlane.xlu1 %4157 }
0x17a3   : > { %v4168_v34 = vmul.f32 0.03125, %v4158_v31 }
0x17a4   : > { %v4173_v36 = vadd.f32 1e-12, %v4169_v17 }
0x17a5   : > { %v4172_v35 = vadd.f32 1e-12, %v4168_v34 }
0x17a6   : > { %5536 = vrsqrt.f32 %v4173_v36  ;;  %v4164_v60 = vpop.xlane.xlu1 %4163 }
0x17a7   : > { %5538 = vrsqrt.f32 %v4172_v35  ;;  %v4170_v18 = vmul.f32 0.03125, %v4164_v60 }
0x17a9   : > { %v4174_v22 = vadd.f32 1e-12, %v4170_v18 }
0x17aa   : > { %v4167_v15 = vpop.xlane.xlu0 %4166 }
0x17ab   : > { %5540 = vrsqrt.f32 %v4174_v22  ;;  %v4171_v37 = vmul.f32 0.03125, %v4167_v15 }
0x17ad   : > { %v4175_v48 = vadd.f32 1e-12, %v4171_v37 }
0x17af   : > { %5542 = vrsqrt.f32 %v4175_v48 }
0x17b0   : > { %v5537_v13 = vpop.eup %5536 }
0x17b1   : > { %v5539_v24 = vpop.eup %5538  ;;  %v4181_v1 = vmul.f32 %v5537_v13, %v4149_v43  ;;  %v4741_v43 = vld [vmem:[%s6455_s3 + $0x50] sm:$0xff] }
0x17b2   : > { %v4180_v46 = vmul.f32 %v5539_v24, %v4148_v42  ;;  %v4742_v42 = vld [vmem:[%s6455_s3 + $0x58] sm:$0xff] }
0x17b3   : > { %v4189_v52 = vmul.f32 %v4187_v50, %v4181_v1 }
0x17b4   : > { %v4188_v53 = vmul.f32 %v4187_v50, %v4180_v46 }
0x17b5   : > { %v5541_v55 = vpop.eup %5540  ;;  %v6357_v41 = vadd.f32 %v4195_v51, %v4189_v52 }
0x17b6   : > { %v6355_v39 = vadd.f32 %v4195_v51, %v4188_v53  ;;  %v4182_v47 = vmul.f32 %v5541_v55, %v4150_v33  ;;  %v5390_v33 = vpack.c.bf16 %v4746_v26, %v4745_v32 }
0x17b8   : > { %5247 = vmatprep.mubr.msk.f32.mxu1 %vm472_vm4, %v6355_v39  ;;  %v4190_v57 = vmul.f32 %v4187_v50, %v4182_v47 }
0x17b9   : > { %v5543_v44 = vpop.eup %5542  ;;  %5248 = vmatmul.mubr.msk.f32.vlgmr.msra.gmra.mrb[54].mxu1 %vm472_vm4, %v6357_v41 }
0x17ba   : > { %v6363_v61 = vadd.f32 %v4195_v51, %v4190_v57  ;;  %v4183_v11 = vmul.f32 %v5543_v44, %v4151_v5 }
0x17bc   : > { %5250 = vmatprep.mubr.msk.f32.mxu1 %vm472_vm4, %v6363_v61  ;;  %v4191_v49 = vmul.f32 %v4187_v50, %v4183_v11 }
0x17be   : > { %v6367_v9 = vadd.f32 %v4195_v51, %v4191_v49 }
0x17c0   : > { %5251 = vmatmul.mubr.msk.f32.gmra.mrb[56].mxu1 %vm472_vm4, %v6367_v9 }
0x17c1   : > { %5283 = vmatprep.mubr.msk.f32.mxu1 %vm5578_vm1, %v5577_v38  ;;  %v5382_v38 = vpack.c.bf16 %v4742_v42, %v4741_v43  ;;  %v4340_v42 = vrot.slane %v6147_v29, %v2366_v4 }
0x17c3   : > { %5383 = vmatprep.subr.bf16.mxu0 %v5382_v38 }
0x17c4   : > { %5385 = vmatpush3.bf16.msra.mxu0 %v5382_v38 }
0x17c5   : > { %5387 = vmatprep.subr.bf16.mxu0 %v5386_v19 }
0x17c8   : > { %5389 = vmatpush3.bf16.msra.mxu0 %v5386_v19 }
0x17c9   : > { %5391 = vmatprep.subr.bf16.mxu0 %v5390_v33 }
0x17cc   : > { %5393 = vmatpush3.bf16.msra.mxu0 %v5390_v33 }
0x188c   : > { %v5249_v0 = vpop.f32.mrb[54].mxu1 }
0x188d   : > { %v4288_v2 = vadd.f32 %v5249_v0, %v4203_v20  ;;  %v4282_v3 = vpop.f32.mrb[55].mxu1 }
0x188e   : > { %v4283_v5 = vadd.f32 %v4282_v3, %v4203_v20 }
0x188f   : > { %v4306_v7 = vmul.f32 0.044715, %v4288_v2  ;;  %v4302_v53 = vmul.f32 0.5, %v4288_v2 }
0x1890   : > { %v4305_v40 = vmul.f32 0.044715, %v4283_v5  ;;  %v4301_v51 = vmul.f32 0.5, %v4283_v5 }
0x1891   : > { %v4310_v8 = vmul.f32 %v4306_v7, %v4288_v2 }
0x1892   : > { %v4309_v45 = vmul.f32 %v4305_v40, %v4283_v5 }
0x1893   : > { %v4314_v16 = vmul.f32 %v4310_v8, %v4288_v2  ;;  %v5252_v14 = vpop.f32.mrb[56].mxu1 }
0x1894   : > { %v4313_v30 = vmul.f32 %v4309_v45, %v4283_v5  ;;  %v4298_v21 = vadd.f32 %v5252_v14, %v4203_v20  ;;  %v4292_v23 = vpop.f32.mrb[57].mxu1 }
0x1895   : > { %v4318_v25 = vadd.f32 %v4314_v16, %v4288_v2  ;;  %v4293_v17 = vadd.f32 %v4292_v23, %v4203_v20 }
0x1896   : > { %v4317_v31 = vadd.f32 %v4313_v30, %v4283_v5  ;;  %v4308_v34 = vmul.f32 0.044715, %v4298_v21  ;;  %v4304_v63 = vmul.f32 0.5, %v4298_v21 }
0x1897   : > { %v4322_v36 = vmul.f32 0.7978846, %v4318_v25  ;;  %v4307_v35 = vmul.f32 0.044715, %v4293_v17  ;;  %v4303_v49 = vmul.f32 0.5, %v4293_v17 }
0x1898   : > { %v4312_v54 = vmul.f32 %v4308_v34, %v4298_v21  ;;  %v4321_v60 = vmul.f32 0.7978846, %v4317_v31 }
0x1899   : > { %5544 = vtanh.f32 %v4322_v36  ;;  %v4311_v18 = vmul.f32 %v4307_v35, %v4293_v17 }
0x189a   : > { %v4316_v22 = vmul.f32 %v4312_v54, %v4298_v21  ;;  %5546 = vtanh.f32 %v4321_v60 }
0x189b   : > { %v4315_v15 = vmul.f32 %v4311_v18, %v4293_v17 }
0x189c   : > { %v4320_v37 = vadd.f32 %v4316_v22, %v4298_v21  ;;  %v467_v22 = vld [vmem:[%s6457_s5] sm:$0xff] }
0x189d   : > { %v4319_v48 = vadd.f32 %v4315_v15, %v4293_v17  ;;  %v468_v15 = vld [vmem:[%s6457_s5 + $0x8] sm:$0xff] }
0x189e   : > { %v4324_v50 = vmul.f32 0.7978846, %v4320_v37  ;;  %v5395_v37 = vpack.c.bf16 %v468_v15, %v467_v22 }
0x189f   : > { %v4323_v13 = vmul.f32 0.7978846, %v4319_v48  ;;  %v5586_v48 = vmov 0.0|0.0  }
0x18a0   : > { %5548 = vtanh.f32 %v4324_v50  ;;  %5394 = vmatprep.subr.bf16.mxu1 %v5586_v48  ;;  %v469_v50 = vld [vmem:[%s6457_s5 + $0x10] sm:$0xff] }
0x18a1   : > { %5550 = vtanh.f32 %v4323_v13  ;;  %v470_v13 = vld [vmem:[%s6457_s5 + $0x18] sm:$0xff]  ;;  %5396 = vmatpush3.bf16.msra.mxu1 %v5395_v37 }
0x18a2   : > { %5397 = vmatprep.subr.bf16.mxu1 %v5586_v48 }
0x18a3   : > { %v5545_v24 = vpop.eup %5544 }
0x18a4   : > { %v5547_v1 = vpop.eup %5546  ;;  %v4330_v46 = vadd.f32 1.0, %v5545_v24  ;;  %v5398_v24 = vpack.c.bf16 %v470_v13, %v469_v50 }
0x18a5   : > { %v4329_v52 = vadd.f32 1.0, %v5547_v1 }
0x18a6   : > { %v4334_v47 = vmul.f32 %v4330_v46, %v4302_v53  ;;  %5399 = vmatpush3.bf16.msra.mxu1 %v5398_v24 }
0x18a7   : > { %v4333_v55 = vmul.f32 %v4329_v52, %v4301_v51 }
0x18a9   : > { %5269 = vmatprep.mubr.msk.f32.mxu0 %vm2368_vm7, %v4333_v55 }
0x18aa   : > { %v5549_v57 = vpop.eup %5548  ;;  %5270 = vmatmul.mubr.msk.f32.vlgmr.msra.gmra.mrb[38].mxu0 %vm2368_vm7, %v4334_v47 }
0x18ab   : > { %v5551_v44 = vpop.eup %5550  ;;  %v4332_v11 = vadd.f32 1.0, %v5549_v57 }
0x18ac   : > { %v4331_v58 = vadd.f32 1.0, %v5551_v44 }
0x18ad   : > { %v4336_v43 = vmul.f32 %v4332_v11, %v4304_v63 }
0x18ae   : > { %v4335_v59 = vmul.f32 %v4331_v58, %v4303_v49 }
0x18b0   : > { %5272 = vmatprep.mubr.msk.f32.mxu0 %vm2368_vm7, %v4335_v59 }
0x18b1   : > { %5273 = vmatmul.mubr.msk.f32.gmra.mrb[40].mxu0 %vm2368_vm7, %v4336_v43  ;;  %v5567_v43 = vld [vmem:[%s6456_s4 + $0x8] sm:$0xff] }
0x197d   : > { %v5271_v38 = vpop.f32.mrb[38].mxu0 }
0x197e   : > { %v4425_v27 = vadd.f32 %v5271_v38, %v4340_v42  ;;  %v4419_v28 = vpop.f32.mrb[39].mxu0 }
0x197f   : > { %v4420_v19 = vadd.f32 %v4419_v28, %v4340_v42 }
0x1980   : > { %v4439_v32 = vadd.f32 %v4425_v27, %v6357_v41 }
0x1981   : > { %v4438_v26 = vadd.f32 %v4420_v19, %v6355_v39  ;;  %v4505_v19 = vrot.slane %v5567_v43, %v2532_v62 }
0x1982   : > { %v4445_v33 = vsel %vm472_vm4, %v4439_v32, 0.0 }
0x1983   : > { %4446 = vadd.xlane.f32.xlu1 %v4445_v33  ;;  %v4442_v5 = vsel %vm472_vm4, %v4438_v26, 0.0 }
0x1984   : > { %v5274_v20 = vpop.f32.mrb[40].mxu0 }
0x1985   : > { %v4429_v0 = vpop.f32.mrb[41].mxu0  ;;  %v4435_v2 = vadd.f32 %v5274_v20, %v4340_v42 }
0x1986   : > { %v4430_v3 = vadd.f32 %v4429_v0, %v4340_v42  ;;  %v4497_v42 = vrot.slane %v5567_v43, %v2524_v56 }
0x1987   : > { %4443 = vadd.xlane.f32.xlu1 %v4442_v5  ;;  %v4441_v29 = vadd.f32 %v4435_v2, %v6367_v9 }
0x1988   : > { %v4440_v4 = vadd.f32 %v4430_v3, %v6363_v61 }
0x1989   : > { %v4451_v41 = vsel %vm472_vm4, %v4441_v29, 0.0 }
0x198a   : > { %v4448_v7 = vsel %vm472_vm4, %v4440_v4, 0.0 }
0x198b   : > { %4449 = vadd.xlane.f32.xlu0 %v4448_v7 }
0x198f   : > { %4452 = vadd.xlane.f32.xlu0 %v4451_v41 }
0x1a10   : > { %v4447_v39 = vpop.xlane.xlu1 %4446 }
0x1a11   : > { %v4455_v40 = vmul.f32 0.03125, %v4447_v39 }
0x1a13   : > { %v4459_v8 = vsub.f32 %v4439_v32, %v4455_v40 }
0x1a14   : > { %v4444_v45 = vpop.xlane.xlu1 %4443 }
0x1a15   : > { %v4454_v16 = vmul.f32 0.03125, %v4444_v45  ;;  %v4463_v14 = vmul.f32 %v4459_v8, %v4459_v8 }
0x1a17   : > { %v4458_v30 = vsub.f32 %v4438_v26, %v4454_v16  ;;  %v4469_v21 = vsel %vm472_vm4, %v4463_v14, 0.0 }
0x1a18   : > { %4470 = vadd.xlane.f32.xlu1 %v4469_v21  ;;  %v4450_v23 = vpop.xlane.xlu0 %4449 }
0x1a19   : > { %v4456_v61 = vmul.f32 0.03125, %v4450_v23  ;;  %v4462_v25 = vmul.f32 %v4458_v30, %v4458_v30 }
0x1a1b   : > { %v4460_v9 = vsub.f32 %v4440_v4, %v4456_v61  ;;  %v4466_v17 = vsel %vm472_vm4, %v4462_v25, 0.0 }
0x1a1c   : > { %4467 = vadd.xlane.f32.xlu1 %v4466_v17  ;;  %v4453_v31 = vpop.xlane.xlu0 %4452 }
0x1a1d   : > { %v4457_v34 = vmul.f32 0.03125, %v4453_v31  ;;  %v4464_v36 = vmul.f32 %v4460_v9, %v4460_v9 }
0x1a1f   : > { %v4461_v35 = vsub.f32 %v4441_v29, %v4457_v34  ;;  %v4472_v54 = vsel %vm472_vm4, %v4464_v36, 0.0 }
0x1a20   : > { %4473 = vadd.xlane.f32.xlu0 %v4472_v54 }
0x1a21   : > { %v4465_v60 = vmul.f32 %v4461_v35, %v4461_v35 }
0x1a23   : > { %v4475_v18 = vsel %vm472_vm4, %v4465_v60, 0.0 }
0x1a24   : > { %4476 = vadd.xlane.f32.xlu0 %v4475_v18 }
0x1aa5   : > { %v4471_v1 = vpop.xlane.xlu1 %4470 }
0x1aa6   : > { %v4479_v46 = vmul.f32 0.03125, %v4471_v1 }
0x1aa8   : > { %v4483_v51 = vadd.f32 1e-12, %v4479_v46 }
0x1aa9   : > { %v4468_v52 = vpop.xlane.xlu1 %4467 }
0x1aaa   : > { %v4478_v53 = vmul.f32 0.03125, %v4468_v52  ;;  %5552 = vrsqrt.f32 %v4483_v51 }
0x1aac   : > { %v4482_v55 = vadd.f32 1e-12, %v4478_v53 }
0x1aad   : > { %v4474_v47 = vpop.xlane.xlu0 %4473 }
0x1aae   : > { %5554 = vrsqrt.f32 %v4482_v55  ;;  %v4480_v57 = vmul.f32 0.03125, %v4474_v47 }
0x1ab0   : > { %v4484_v44 = vadd.f32 1e-12, %v4480_v57 }
0x1ab1   : > { %v4477_v11 = vpop.xlane.xlu0 %4476 }
0x1ab2   : > { %5556 = vrsqrt.f32 %v4484_v44  ;;  %v4481_v49 = vmul.f32 0.03125, %v4477_v11 }
0x1ab4   : > { %v4485_v58 = vadd.f32 1e-12, %v4481_v49  ;;  %v5553_v63 = vpop.eup %5552 }
0x1ab5   : > { %v4491_v38 = vmul.f32 %v5553_v63, %v4459_v8  ;;  %v5568_v8 = vld [vmem:[%s6457_s5 + $0x20] sm:$0x1f] }
0x1ab6   : > { %5558 = vrsqrt.f32 %v4485_v58  ;;  %v4510_v45 = vrot.slane %v5568_v8, 4  ;;  %v4515_v16 = vrot.slane %v5568_v8, %v5661_v12  ;;  %v4605_v23 = vrot.slane %v5568_v8, %v5655_v10 }
0x1ab7   : > { %v4499_v32 = vmul.f32 %v4497_v42, %v4491_v38 }
0x1ab8   : > { %v5555_v59 = vpop.eup %5554  ;;  %5400 = vpush %v4510_v45 }
0x1ab9   : > { %v4490_v27 = vmul.f32 %v5555_v59, %v4458_v30  ;;  %v4507_v2 = vadd.f32 %v4505_v19, %v4499_v32 }
0x1abb   : > { %v4498_v33 = vmul.f32 %v4497_v42, %v4490_v27  ;;  %v4520_v41 = vrot.slane %v4507_v2, 7 }
0x1abc   : > { %v5557_v28 = vpop.eup %5556 }
0x1abd   : > { %v4492_v26 = vmul.f32 %v5557_v28, %v4460_v9  ;;  %v4506_v4 = vadd.f32 %v4505_v19, %v4498_v33 }
0x1abf   : > { %v4500_v20 = vmul.f32 %v4497_v42, %v4492_v26  ;;  %v4522_v39 = vsel %vm4521_vm8, %v4520_v41, %v4506_v4 }
0x1ac0   : > { %v5559_v0 = vpop.eup %5558 }
0x1ac1   : > { %v4493_v3 = vmul.f32 %v5559_v0, %v4461_v35  ;;  %v4508_v5 = vadd.f32 %v4505_v19, %v4500_v20 }
0x1ac3   : > { %v4501_v29 = vmul.f32 %v4497_v42, %v4493_v3  ;;  %v4523_v7 = vrot.slane %v4508_v5, 6 }
0x1ac5   : > { %v4509_v56 = vadd.f32 %v4505_v19, %v4501_v29  ;;  %v4525_v6 = vsel %vm4524_vm9, %v4523_v7, %v4522_v39 }
0x1ac7   : > { %v4526_v40 = vrot.slane %v4509_v56, 5 }
0x1ac9   : > { %v4528_v62 = vsel %vm4527_vm10, %v4526_v40, %v4525_v6 }
0x1aca   : > { %5284 = vmatmul.mubr.msk.f32.vlgmr.msra.gmra.mrb[58].mxu1 %vm472_vm4, %v4528_v62 }
0x1ae9   : > { %s5401_s24 = spop %5400 }
0x1aea   : > { %v4611_v17 = vstv %s5401_s24 }
0x1b9d   : > { %v4597_v14 = vpop.f32.mrb[58].mxu1 }
0x1b9e   : > { %v4598_v30 = vadd.f32 %v4597_v14, %v4515_v16  ;;  %v5285_v21 = vpop.f32.mrb[59].mxu1 }
0x1ba0   : > { %5560 = vtanh.f32 %v4598_v30 }
0x1baa   : > { %v5561_v61 = vpop.eup %5560 }
0x1bab   : > { %v4606_v25 = vmul.f32 %v5561_v61, %v4605_v23 }
0x1bad   : > { %v4608_v9 = vsel %vm4607_vm11, %v4606_v25, 0.0 }
0x1bae   : > { %4609 = vadd.xlane.f32.xlu1 %v4608_v9 }
0x1c3b   : > { %v4610_v31 = vpop.xlane.xlu1 %4609 }
0x1c3c   : > { %v4612_v34 = vadd.f32 %v4611_v17, %v4610_v31 }
0x1c3e   : > { %v4613_v36 = vsub.f32 0.0, %v4612_v34 }
0x1c40   : > { %v4614_v35 = vmul.f32 1.442695, %v4613_v36 }
0x1c42   : > { %5562 = vpow2.f32 %v4614_v35 }
0x1c4c   : > { %v5563_v12 = vpop.eup %5562 }
0x1c4d   : > { %v4616_v54 = vadd.f32 1.0, %v5563_v12 }
0x1c4f   : > { %5564 = vrcp.f32 %v4616_v54 }
0x1c59   : > { %v5565_v10 = vpop.eup %5564 }
0x1c5a   : > { %4620 = vst.msk [vmem:[%s251_s11] sm:$0xf] %vm4619_vm12, %v5565_v10 }
0x1c5b PF: > { %s16_s21 = sadd.s32 1, %s5575_s21  }
0x1c5c   : > { %p13_p5 = scmp.ge.s32.totalorder %s16_s21, 4  }
0x1c5e   :  { %15 = sbr.rel (!%p13_p5) target bundleno = 1 (0x1), region = 77 }

</bundles_post_ra>
